<compile_context>
chip_gen: v7x
topology: tpu7x:2x2x1
jax: 0.10.0
libtpu: 0.0.40
codegen_flags: <defaults>
</compile_context>

<pallas_src>
import functools

import jax
import jax.numpy as jnp
from jax import lax
from jax.experimental import pallas as pl
from jax.experimental.pallas import tpu as pltpu


def _round_up(x, m):
    return (x + m - 1) // m * m


def _vmem_capacity_bytes():
    """Physical VMEM of the current TPU generation (fallback: v7x's 64 MiB)."""
    try:
        info = pltpu.get_tpu_info()
        cap = int(getattr(info, "vmem_capacity_bytes", 0))
        if cap > 0:
            return cap
    except Exception:
        pass
    return 64 * 1024 * 1024


def _chunk_vmem_bytes(T, Bp, E, Hp):
    """Approx VMEM for one pipelined chunk config (default double-buffering)."""
    emb = 2 * 2 * T * Bp * E * 4            # emb fwd+bwd chunks, double-buffered, f32
    outs = 2 * 2 * T * Bp * Hp * 4          # out fwd+bwd chunks, double-buffered, f32
    w_ih = 2 * 2 * E * 3 * Hp * 2           # bf16 input weights (fwd+bwd, 2 bufs)
    w_hh = 2 * 2 * Hp * 3 * Hp * 2          # bf16 hidden weights (fwd+bwd, 2 bufs)
    bias = 2 * 2 * (3 * Hp + Hp) * 4
    carry = 2 * Bp * Hp * 4                 # h_f / h_b VMEM scratch
    hid = 2 * Bp * 2 * Hp * 4               # resident hid output block
    return emb + outs + w_ih + w_hh + bias + carry + hid


def _pick_chunk(S, Bp, E, Hp, budget):
    """Largest chunk length T (<= min(S,256)) whose pipeline fits the budget."""
    for T in range(min(S, 256), 0, -1):
        if _chunk_vmem_bytes(T, Bp, E, Hp) <= budget:
            return T
    return 1


def _bigru_chunk_kernel(embf_ref, embb_ref,
                        wi_f_ref, wi_b_ref, wh_f_ref, wh_b_ref,
                        brz_f_ref, brz_b_ref, bn_f_ref, bn_b_ref,
                        outf_ref, outb_ref, hid_ref,
                        hf_ref, hb_ref,
                        *, hp, seq_len, mask_tail, unroll):
    """One sequence-chunk of a fused bidirectional GRU with fused input proj.

    embf_ref/embb_ref : [T, Bp, E]  f32 embedding chunks (bwd stream is the
                        reversed-chunk traversal of the same array).
    wi_*_ref          : [E, 3Hp]    bf16 input->hidden weights (r|z|n).
    wh_*_ref          : [Hp, 3Hp]   bf16 hidden->hidden weights (r|z|n).
    brz_*_ref         : [1, 3Hp]    b_ih + b_hh[r,z] folded (f32).
    bn_*_ref          : [1, Hp]     b_hh_n (f32, stays inside r*(...)).
    outf/outb_ref     : [T, Bp, Hp] per-step hidden states.
    hid_ref           : [Bp, 2Hp]   final hidden (fwd | bwd), written last chunk.
    hf_ref/hb_ref     : [Bp, Hp]    f32 scratch carrying h across grid steps.
    """
    T, Bp, _ = embf_ref.shape
    c = pl.program_id(0)
    nc = pl.num_programs(0)

    @pl.when(c == 0)
    def _init():
        hf_ref[...] = jnp.zeros_like(hf_ref)
        hb_ref[...] = jnp.zeros_like(hb_ref)

    # Hoist weight loads and bias broadcasts out of the time loop.
    wi_f = wi_f_ref[...]
    wi_b = wi_b_ref[...]
    wh_f = wh_f_ref[...]
    wh_b = wh_b_ref[...]
    brz_f = jnp.broadcast_to(brz_f_ref[...], (Bp, 3 * hp))
    brz_b = jnp.broadcast_to(brz_b_ref[...], (Bp, 3 * hp))
    bn_f = jnp.broadcast_to(bn_f_ref[...], (Bp, hp))
    bn_b = jnp.broadcast_to(bn_b_ref[...], (Bp, hp))

    def sigmoid(x):
        # Single EUP tanh push instead of exp + reciprocal.
        return 0.5 * (1.0 + jnp.tanh(0.5 * x))

    def gru_step(x_t, h, w_ih, w_hh, b_rz, b_n):
        # Input projection fused in-kernel (independent of h -> hides under the
        # recurrence's MXU/EUP latency).
        gx = jnp.dot(x_t.astype(w_ih.dtype), w_ih,
                     preferred_element_type=jnp.float32) + b_rz
        gh = jnp.dot(h.astype(w_hh.dtype), w_hh,
                     preferred_element_type=jnp.float32)
        r = sigmoid(gx[:, 0:hp] + gh[:, 0:hp])
        z = sigmoid(gx[:, hp:2 * hp] + gh[:, hp:2 * hp])
        n = jnp.tanh(gx[:, 2 * hp:3 * hp] + r * (gh[:, 2 * hp:3 * hp] + b_n))
        return (1.0 - z) * n + z * h

    def step(t, carry):
        h_f, h_b = carry
        rt = T - 1 - t
        h_f_new = gru_step(embf_ref[t], h_f, wi_f, wh_f, brz_f, bn_f)
        h_b_new = gru_step(embb_ref[rt], h_b, wi_b, wh_b, brz_b, bn_b)
        if mask_tail:
            # Padded tail timesteps (global index >= seq_len) must not advance h.
            gt_f = c * T + t
            gt_b = (nc - 1 - c) * T + rt
            h_f_new = jnp.where(gt_f < seq_len, h_f_new, h_f)
            h_b_new = jnp.where(gt_b < seq_len, h_b_new, h_b)
        outf_ref[t] = h_f_new
        outb_ref[rt] = h_b_new
        return (h_f_new, h_b_new)

    h_f, h_b = lax.fori_loop(0, T, step, (hf_ref[...], hb_ref[...]),
                             unroll=unroll)
    hf_ref[...] = h_f
    hb_ref[...] = h_b

    @pl.when(c == pl.num_programs(0) - 1)
    def _finalize():
        hid_ref[:, 0:hp] = h_f
        hid_ref[:, hp:2 * hp] = h_b


def _pad_gates_cols(m, H, Hp):
    """[*, 3H] (r|z|n) -> [*, 3Hp] with each gate zero-padded to Hp lanes."""
    rows = m.shape[0]
    out = jnp.zeros((rows, 3 * Hp), m.dtype)
    for g in range(3):
        out = out.at[:, g * Hp:g * Hp + H].set(m[:, g * H:(g + 1) * H])
    return out


def _prep_direction(w_ih, w_hh, b_ih, b_hh, H, Hp):
    """Lane-align gates, fold b_ih + b_hh[r,z] into one bias, bf16 weights."""
    w_ih_p = _pad_gates_cols(w_ih, H, Hp).astype(jnp.bfloat16)            # [E, 3Hp]
    w_hh_p = jnp.zeros((Hp, 3 * Hp), jnp.float32)
    w_hh_p = w_hh_p.at[:H, :].set(_pad_gates_cols(w_hh, H, Hp))           # [Hp, 3Hp]
    b_fold = b_ih.at[:, :2 * H].add(b_hh[:, :2 * H])                      # r,z folded
    b_fold_p = _pad_gates_cols(b_fold, H, Hp)                             # [1, 3Hp]
    b_n_p = jnp.zeros((1, Hp), jnp.float32).at[:, :H].set(b_hh[:, 2 * H:3 * H])
    return w_ih_p, w_hh_p.astype(jnp.bfloat16), b_fold_p, b_n_p


def init_encoder_params(key, vocab_dim, emb_dim, hid_dim):
    """Deterministic parameter init matching the PyTorch module's shapes."""
    ks = jax.random.split(key, 9)
    bound = 1.0 / jnp.sqrt(hid_dim)

    def u(k, shape):
        return jax.random.uniform(k, shape, jnp.float32, -bound, bound)

    return {
        "embedding": jax.random.normal(ks[0], (vocab_dim, emb_dim), jnp.float32),
        # forward direction (PyTorch weight_ih_l0 is [3H, E]; stored as [E, 3H])
        "w_ih_f": u(ks[1], (emb_dim, 3 * hid_dim)),
        "w_hh_f": u(ks[2], (hid_dim, 3 * hid_dim)),
        "b_ih_f": u(ks[3], (1, 3 * hid_dim)),
        "b_hh_f": u(ks[4], (1, 3 * hid_dim)),
        # backward direction (weight_*_l0_reverse)
        "w_ih_b": u(ks[5], (emb_dim, 3 * hid_dim)),
        "w_hh_b": u(ks[6], (hid_dim, 3 * hid_dim)),
        "b_ih_b": u(ks[7], (1, 3 * hid_dim)),
        "b_hh_b": u(ks[8], (1, 3 * hid_dim)),
    }


def encoder_forward(token_ids, params, hid_dim, mode="concat", seq_chunk=None):
    """Reproduces Encoder.forward: (out [B,S,2H], hid [B,2H] or [B,H])."""
    B, S = token_ids.shape
    E = params["embedding"].shape[1]
    H = hid_dim
    Hp = _round_up(H, 128)
    Bp = _round_up(B, 8)

    # Embedding gather emitted directly time-major: [S, B, E] (no transpose pass).
    emb_t = params["embedding"][jnp.swapaxes(token_ids, 0, 1)]

    # VMEM-budgeted chunk length; pad S to a multiple of T (masked in-kernel).
    cap = _vmem_capacity_bytes()
    budget = min(int(cap * 0.75), 100 * 1024 * 1024)
    if seq_chunk is None:
        T = _pick_chunk(S, Bp, E, Hp, budget)
    else:
        T = max(1, min(int(seq_chunk), S))     # user chunk honored (never ignored)
    Sp = _round_up(S, T)
    nc = Sp // T
    mask_tail = (Sp != S)

    needed = _chunk_vmem_bytes(T, Bp, E, Hp)
    vmem_limit = int(min(max(needed + (8 << 20), 32 << 20), int(cap * 0.9)))

    if Sp != S or Bp != B:
        emb_t = jnp.pad(emb_t, ((0, Sp - S), (0, Bp - B), (0, 0)))

    wi_f, wh_f, brz_f, bn_f = _prep_direction(
        params["w_ih_f"], params["w_hh_f"], params["b_ih_f"], params["b_hh_f"], H, Hp)
    wi_b, wh_b, brz_b, bn_b = _prep_direction(
        params["w_ih_b"], params["w_hh_b"], params["b_ih_b"], params["b_hh_b"], H, Hp)

    if T <= 16:
        unroll = True
    elif T % 8 == 0 and Bp <= 16:
        unroll = 8
    elif T % 4 == 0:
        unroll = 4
    else:
        unroll = True if T <= 32 else False

    kernel = functools.partial(_bigru_chunk_kernel, hp=Hp, seq_len=S,
                               mask_tail=mask_tail, unroll=unroll)

    out_f, out_b, hid_pad = pl.pallas_call(
        kernel,
        out_shape=(
            jax.ShapeDtypeStruct((Sp, Bp, Hp), jnp.float32),
            jax.ShapeDtypeStruct((Sp, Bp, Hp), jnp.float32),
            jax.ShapeDtypeStruct((Bp, 2 * Hp), jnp.float32),
        ),
        grid=(nc,),
        in_specs=[
            pl.BlockSpec((T, Bp, E), lambda c: (c, 0, 0)),            # emb fwd chunk
            pl.BlockSpec((T, Bp, E), lambda c: (nc - 1 - c, 0, 0)),   # emb bwd chunk
            pl.BlockSpec((E, 3 * Hp), lambda c: (0, 0)),
            pl.BlockSpec((E, 3 * Hp), lambda c: (0, 0)),
            pl.BlockSpec((Hp, 3 * Hp), lambda c: (0, 0)),
            pl.BlockSpec((Hp, 3 * Hp), lambda c: (0, 0)),
            pl.BlockSpec((1, 3 * Hp), lambda c: (0, 0)),
            pl.BlockSpec((1, 3 * Hp), lambda c: (0, 0)),
            pl.BlockSpec((1, Hp), lambda c: (0, 0)),
            pl.BlockSpec((1, Hp), lambda c: (0, 0)),
        ],
        out_specs=(
            pl.BlockSpec((T, Bp, Hp), lambda c: (c, 0, 0)),
            pl.BlockSpec((T, Bp, Hp), lambda c: (nc - 1 - c, 0, 0)),
            pl.BlockSpec((Bp, 2 * Hp), lambda c: (0, 0)),
        ),
        scratch_shapes=[
            pltpu.VMEM((Bp, Hp), jnp.float32),
            pltpu.VMEM((Bp, Hp), jnp.float32),
        ],
        compiler_params=pltpu.CompilerParams(
            dimension_semantics=("arbitrary",),
            vmem_limit_bytes=vmem_limit),
    )(emb_t, emb_t, wi_f, wi_b, wh_f, wh_b, brz_f, brz_b, bn_f, bn_b)

    # De-pad + assemble the PyTorch batch-first layout (tiny glue pass; required
    # by the module's output contract).
    out = jnp.concatenate([out_f[:S, :B, :H], out_b[:S, :B, :H]], axis=-1)
    out = jnp.transpose(out, (1, 0, 2))                        # [B, S, 2H]
    hid_f = hid_pad[:B, :H]
    hid_b = hid_pad[:B, Hp:Hp + H]
    hid = jnp.concatenate([hid_f, hid_b], axis=1) if mode == "concat" else hid_f + hid_b
    # TODO(synk): nn.GRU dropout is a no-op for a single-layer GRU, so it is omitted.
    return out, hid


def _reference_encoder(token_ids, params, hid_dim, mode="concat"):
    """Pure-JAX reference mirroring PyTorch nn.GRU (bf16 matmuls like the kernel)."""
    emb = params["embedding"][token_ids]                       # [B, S, E]
    H = hid_dim

    def run_dir(x_bse, w_ih, w_hh, b_ih, b_hh):
        w_ih16 = w_ih.astype(jnp.bfloat16)
        w_hh16 = w_hh.astype(jnp.bfloat16)

        def step(h, x_t):
            gx = jnp.dot(x_t.astype(jnp.bfloat16), w_ih16,
                         preferred_element_type=jnp.float32) + b_ih
            gh = jnp.dot(h.astype(jnp.bfloat16), w_hh16,
                         preferred_element_type=jnp.float32) + b_hh
            r = jax.nn.sigmoid(gx[:, :H] + gh[:, :H])
            z = jax.nn.sigmoid(gx[:, H:2 * H] + gh[:, H:2 * H])
            n = jnp.tanh(gx[:, 2 * H:] + r * gh[:, 2 * H:])
            h_new = (1.0 - z) * n + z * h
            return h_new, h_new

        h0 = jnp.zeros((x_bse.shape[0], H), jnp.float32)
        h_last, outs = lax.scan(step, h0, jnp.swapaxes(x_bse, 0, 1))
        return jnp.swapaxes(outs, 0, 1), h_last                # [B,S,H], [B,H]

    out_f, hid_f = run_dir(emb, params["w_ih_f"], params["w_hh_f"],
                           params["b_ih_f"], params["b_hh_f"])
    out_b_rev, hid_b = run_dir(emb[:, ::-1], params["w_ih_b"], params["w_hh_b"],
                               params["b_ih_b"], params["b_hh_b"])
    out_b = out_b_rev[:, ::-1]
    out = jnp.concatenate([out_f, out_b], axis=-1)
    hid = jnp.concatenate([hid_f, hid_b], axis=1) if mode == "concat" else hid_f + hid_b
    return out, hid


if __name__ == "__main__":
    vocab_dim, emb_dim, hid_dim = 50, 16, 32
    batch, seq = 2, 8

    key = jax.random.PRNGKey(0)
    k_params, k_tokens = jax.random.split(key)
    params = init_encoder_params(k_params, vocab_dim, emb_dim, hid_dim)
    token_ids = jax.random.randint(k_tokens, (batch, seq), 0, vocab_dim, jnp.int32)

    out_exp, hid_exp = _reference_encoder(token_ids, params, hid_dim, mode="concat")

    # seq_chunk=3 -> Sp=9, grid=(3,): exercises the pipelined chunk axis, the
    # cross-chunk VMEM hidden-state carry AND the padded-tail masking path.
    out, hid = encoder_forward(token_ids, params, hid_dim, mode="concat", seq_chunk=3)
    out = jax.block_until_ready(out)
    hid = jax.block_until_ready(hid)
    assert out.shape == (batch, seq, 2 * hid_dim), out.shape
    assert hid.shape == (batch, 2 * hid_dim), hid.shape
    assert bool(jnp.all(jnp.isfinite(out))) and bool(jnp.all(jnp.isfinite(hid)))
    err_out = float(jnp.max(jnp.abs(out - out_exp)))
    err_hid = float(jnp.max(jnp.abs(hid - hid_exp)))
    assert err_out < 2e-3 and err_hid < 2e-3, (err_out, err_hid)

    # Auto (VMEM-budgeted) chunking path: single chunk, no tail masking.
    out2, hid2 = encoder_forward(token_ids, params, hid_dim, mode="concat")
    out2 = jax.block_until_ready(out2)
    hid2 = jax.block_until_ready(hid2)
    err_out2 = float(jnp.max(jnp.abs(out2 - out_exp)))
    err_hid2 = float(jnp.max(jnp.abs(hid2 - hid_exp)))
    assert err_out2 < 2e-3 and err_hid2 < 2e-3, (err_out2, err_hid2)

    print("KERNEL_OK")
</pallas_src>

<mosaic_0001>
module attributes {stable_mosaic.version = 11 : i64} {
  func.func @_bigru_chunk_kernel(%arg0: i32, %arg1: memref<3x8x16xf32, #tpu.memory_space<vmem>>, %arg2: memref<3x8x16xf32, #tpu.memory_space<vmem>>, %arg3: memref<16x384xbf16, #tpu.memory_space<vmem>>, %arg4: memref<16x384xbf16, #tpu.memory_space<vmem>>, %arg5: memref<128x384xbf16, #tpu.memory_space<vmem>>, %arg6: memref<128x384xbf16, #tpu.memory_space<vmem>>, %arg7: memref<1x384xf32, #tpu.memory_space<vmem>>, %arg8: memref<1x384xf32, #tpu.memory_space<vmem>>, %arg9: memref<1x128xf32, #tpu.memory_space<vmem>>, %arg10: memref<1x128xf32, #tpu.memory_space<vmem>>, %arg11: memref<3x8x128xf32, #tpu.memory_space<vmem>>, %arg12: memref<3x8x128xf32, #tpu.memory_space<vmem>>, %arg13: memref<8x256xf32, #tpu.memory_space<vmem>>, %arg14: memref<8x128xf32, #tpu.memory_space<vmem>>, %arg15: memref<8x128xf32, #tpu.memory_space<vmem>>) attributes {dimension_semantics = [#tpu.dimension_semantics<arbitrary>], iteration_bounds = array<i64: 3>, scalar_prefetch = 0 : i64, scratch_operands = 2 : i64, tpu.core_type = #tpu.core_type<tc>, window_params = [{transform_indices = @transform_0, window_bounds = array<i64: 3, 8, 16>}, {transform_indices = @transform_1, window_bounds = array<i64: 3, 8, 16>}, {pipeline_mode = #tpu.pipeline_mode<synchronous>, transform_indices = @transform_2, window_bounds = array<i64: 16, 384>}, {pipeline_mode = #tpu.pipeline_mode<synchronous>, transform_indices = @transform_3, window_bounds = array<i64: 16, 384>}, {pipeline_mode = #tpu.pipeline_mode<synchronous>, transform_indices = @transform_4, window_bounds = array<i64: 128, 384>}, {pipeline_mode = #tpu.pipeline_mode<synchronous>, transform_indices = @transform_5, window_bounds = array<i64: 128, 384>}, {pipeline_mode = #tpu.pipeline_mode<synchronous>, transform_indices = @transform_6, window_bounds = array<i64: 1, 384>}, {pipeline_mode = #tpu.pipeline_mode<synchronous>, transform_indices = @transform_7, window_bounds = array<i64: 1, 384>}, {pipeline_mode = #tpu.pipeline_mode<synchronous>, transform_indices = @transform_8, window_bounds = array<i64: 1, 128>}, {pipeline_mode = #tpu.pipeline_mode<synchronous>, transform_indices = @transform_9, window_bounds = array<i64: 1, 128>}, {transform_indices = @transform_10, window_bounds = array<i64: 3, 8, 128>}, {transform_indices = @transform_11, window_bounds = array<i64: 3, 8, 128>}, {pipeline_mode = #tpu.pipeline_mode<synchronous>, transform_indices = @transform_12, window_bounds = array<i64: 8, 256>}]} {
    %c0_i32 = arith.constant 0 : i32
    %0 = arith.cmpi eq, %arg0, %c0_i32 : i32
    %1 = arith.extui %0 : i1 to i32
    %c0_i32_0 = arith.constant 0 : i32
    %2 = arith.cmpi ne, %1, %c0_i32_0 : i32
    scf.if %2 {
      %cst_121 = arith.constant 0.000000e+00 : f32
      %314 = vector.broadcast %cst_121 : f32 to vector<8x128xf32>
      %c0_122 = arith.constant 0 : index
      %c0_123 = arith.constant 0 : index
      %315 = vector.load %arg14[%c0_122, %c0_123] : memref<8x128xf32, #tpu.memory_space<vmem>>, vector<8x128xf32>
      tpu.vector_store %arg14[%c0_122, %c0_123], %314 {strides = array<i32>} : memref<8x128xf32, #tpu.memory_space<vmem>>, vector<8x128xf32>,
      %cst_124 = arith.constant 0.000000e+00 : f32
      %316 = vector.broadcast %cst_124 : f32 to vector<8x128xf32>
      %c0_125 = arith.constant 0 : index
      %c0_126 = arith.constant 0 : index
      %317 = vector.load %arg15[%c0_125, %c0_126] : memref<8x128xf32, #tpu.memory_space<vmem>>, vector<8x128xf32>
      tpu.vector_store %arg15[%c0_125, %c0_126], %316 {strides = array<i32>} : memref<8x128xf32, #tpu.memory_space<vmem>>, vector<8x128xf32>,
    } else {
    }
    %c0 = arith.constant 0 : index
    %c0_1 = arith.constant 0 : index
    %3 = vector.load %arg3[%c0, %c0_1] : memref<16x384xbf16, #tpu.memory_space<vmem>>, vector<16x384xbf16>
    %c0_2 = arith.constant 0 : index
    %c0_3 = arith.constant 0 : index
    %4 = vector.load %arg4[%c0_2, %c0_3] : memref<16x384xbf16, #tpu.memory_space<vmem>>, vector<16x384xbf16>
    %c0_4 = arith.constant 0 : index
    %c0_5 = arith.constant 0 : index
    %5 = vector.load %arg5[%c0_4, %c0_5] : memref<128x384xbf16, #tpu.memory_space<vmem>>, vector<128x384xbf16>
    %c0_6 = arith.constant 0 : index
    %c0_7 = arith.constant 0 : index
    %6 = vector.load %arg6[%c0_6, %c0_7] : memref<128x384xbf16, #tpu.memory_space<vmem>>, vector<128x384xbf16>
    %c0_8 = arith.constant 0 : index
    %c0_9 = arith.constant 0 : index
    %7 = vector.load %arg7[%c0_8, %c0_9] : memref<1x384xf32, #tpu.memory_space<vmem>>, vector<1x384xf32>
    %8 = vector.shape_cast %7 : vector<1x384xf32> to vector<1x384xf32>
    %9 = vector.broadcast %8 : vector<1x384xf32> to vector<8x384xf32>
    %c0_10 = arith.constant 0 : index
    %c0_11 = arith.constant 0 : index
    %10 = vector.load %arg8[%c0_10, %c0_11] : memref<1x384xf32, #tpu.memory_space<vmem>>, vector<1x384xf32>
    %11 = vector.shape_cast %10 : vector<1x384xf32> to vector<1x384xf32>
    %12 = vector.broadcast %11 : vector<1x384xf32> to vector<8x384xf32>
    %c0_12 = arith.constant 0 : index
    %c0_13 = arith.constant 0 : index
    %13 = vector.load %arg9[%c0_12, %c0_13] : memref<1x128xf32, #tpu.memory_space<vmem>>, vector<1x128xf32>
    %14 = vector.shape_cast %13 : vector<1x128xf32> to vector<1x128xf32>
    %15 = vector.broadcast %14 : vector<1x128xf32> to vector<8x128xf32>
    %c0_14 = arith.constant 0 : index
    %c0_15 = arith.constant 0 : index
    %16 = vector.load %arg10[%c0_14, %c0_15] : memref<1x128xf32, #tpu.memory_space<vmem>>, vector<1x128xf32>
    %17 = vector.shape_cast %16 : vector<1x128xf32> to vector<1x128xf32>
    %18 = vector.broadcast %17 : vector<1x128xf32> to vector<8x128xf32>
    %c0_16 = arith.constant 0 : index
    %c0_17 = arith.constant 0 : index
    %19 = vector.load %arg14[%c0_16, %c0_17] : memref<8x128xf32, #tpu.memory_space<vmem>>, vector<8x128xf32>
    %c0_18 = arith.constant 0 : index
    %c0_19 = arith.constant 0 : index
    %20 = vector.load %arg15[%c0_18, %c0_19] : memref<8x128xf32, #tpu.memory_space<vmem>>, vector<8x128xf32>
    %c0_i32_20 = arith.constant 0 : i32
    %c2_i32 = arith.constant 2 : i32
    %21 = arith.subi %c2_i32, %c0_i32_20 : i32
    %22 = arith.index_cast %c0_i32_20 : i32 to index
    %c0_21 = arith.constant 0 : index
    %c0_22 = arith.constant 0 : index
    %23 = vector.load %arg1[%22, %c0_21, %c0_22] : memref<3x8x16xf32, #tpu.memory_space<vmem>>, vector<1x8x16xf32>
    %24 = vector.shape_cast %23 : vector<1x8x16xf32> to vector<8x16xf32>
    %25 = arith.truncf %24 : vector<8x16xf32> to vector<8x16xbf16>
    %cst = arith.constant dense<0.000000e+00> : vector<8x384xf32>
    %26 = tpu.matmul %25, %3, %cst {dimension_numbers = #tpu.dot_dimension_numbers<[1], [0], [0], [1], [0, 0, 1, 1], [], []>} : vector<8x16xbf16>, vector<16x384xbf16>, vector<8x384xf32> -> vector<8x384xf32>
    %27 = arith.addf %26, %9 : vector<8x384xf32>
    %28 = arith.truncf %19 : vector<8x128xf32> to vector<8x128xbf16>
    %cst_23 = arith.constant dense<0.000000e+00> : vector<8x384xf32>
    %29 = tpu.matmul %28, %5, %cst_23 {dimension_numbers = #tpu.dot_dimension_numbers<[1], [0], [0], [1], [0, 0, 1, 1], [], []>} : vector<8x128xbf16>, vector<128x384xbf16>, vector<8x384xf32> -> vector<8x384xf32>
    %30 = vector.extract_strided_slice %27 {offsets = [0, 0], sizes = [8, 128], strides = [1, 1]} : vector<8x384xf32> to vector<8x128xf32>
    %31 = vector.extract_strided_slice %29 {offsets = [0, 0], sizes = [8, 128], strides = [1, 1]} : vector<8x384xf32> to vector<8x128xf32>
    %32 = arith.addf %30, %31 : vector<8x128xf32>
    %cst_24 = arith.constant 5.000000e-01 : f32
    %33 = vector.broadcast %cst_24 : f32 to vector<8x128xf32>
    %34 = arith.mulf %33, %32 : vector<8x128xf32>
    %35 = math.tanh %34 : vector<8x128xf32>
    %cst_25 = arith.constant 1.000000e+00 : f32
    %36 = vector.broadcast %cst_25 : f32 to vector<8x128xf32>
    %37 = arith.addf %36, %35 : vector<8x128xf32>
    %cst_26 = arith.constant 5.000000e-01 : f32
    %38 = vector.broadcast %cst_26 : f32 to vector<8x128xf32>
    %39 = arith.mulf %38, %37 : vector<8x128xf32>
    %40 = vector.extract_strided_slice %27 {offsets = [0, 128], sizes = [8, 128], strides = [1, 1]} : vector<8x384xf32> to vector<8x128xf32>
    %41 = vector.extract_strided_slice %29 {offsets = [0, 128], sizes = [8, 128], strides = [1, 1]} : vector<8x384xf32> to vector<8x128xf32>
    %42 = arith.addf %40, %41 : vector<8x128xf32>
    %cst_27 = arith.constant 5.000000e-01 : f32
    %43 = vector.broadcast %cst_27 : f32 to vector<8x128xf32>
    %44 = arith.mulf %43, %42 : vector<8x128xf32>
    %45 = math.tanh %44 : vector<8x128xf32>
    %cst_28 = arith.constant 1.000000e+00 : f32
    %46 = vector.broadcast %cst_28 : f32 to vector<8x128xf32>
    %47 = arith.addf %46, %45 : vector<8x128xf32>
    %cst_29 = arith.constant 5.000000e-01 : f32
    %48 = vector.broadcast %cst_29 : f32 to vector<8x128xf32>
    %49 = arith.mulf %48, %47 : vector<8x128xf32>
    %50 = vector.extract_strided_slice %27 {offsets = [0, 256], sizes = [8, 128], strides = [1, 1]} : vector<8x384xf32> to vector<8x128xf32>
    %51 = vector.extract_strided_slice %29 {offsets = [0, 256], sizes = [8, 128], strides = [1, 1]} : vector<8x384xf32> to vector<8x128xf32>
    %52 = arith.addf %51, %15 : vector<8x128xf32>
    %53 = arith.mulf %39, %52 : vector<8x128xf32>
    %54 = arith.addf %50, %53 : vector<8x128xf32>
    %55 = math.tanh %54 : vector<8x128xf32>
    %cst_30 = arith.constant 1.000000e+00 : f32
    %56 = vector.broadcast %cst_30 : f32 to vector<8x128xf32>
    %57 = arith.subf %56, %49 : vector<8x128xf32>
    %58 = arith.mulf %57, %55 : vector<8x128xf32>
    %59 = arith.mulf %49, %19 : vector<8x128xf32>
    %60 = arith.addf %58, %59 : vector<8x128xf32>
    %61 = arith.index_cast %21 : i32 to index
    %c0_31 = arith.constant 0 : index
    %c0_32 = arith.constant 0 : index
    %62 = vector.load %arg2[%61, %c0_31, %c0_32] : memref<3x8x16xf32, #tpu.memory_space<vmem>>, vector<1x8x16xf32>
    %63 = vector.shape_cast %62 : vector<1x8x16xf32> to vector<8x16xf32>
    %64 = arith.truncf %63 : vector<8x16xf32> to vector<8x16xbf16>
    %cst_33 = arith.constant dense<0.000000e+00> : vector<8x384xf32>
    %65 = tpu.matmul %64, %4, %cst_33 {dimension_numbers = #tpu.dot_dimension_numbers<[1], [0], [0], [1], [0, 0, 1, 1], [], []>} : vector<8x16xbf16>, vector<16x384xbf16>, vector<8x384xf32> -> vector<8x384xf32>
    %66 = arith.addf %65, %12 : vector<8x384xf32>
    %67 = arith.truncf %20 : vector<8x128xf32> to vector<8x128xbf16>
    %cst_34 = arith.constant dense<0.000000e+00> : vector<8x384xf32>
    %68 = tpu.matmul %67, %6, %cst_34 {dimension_numbers = #tpu.dot_dimension_numbers<[1], [0], [0], [1], [0, 0, 1, 1], [], []>} : vector<8x128xbf16>, vector<128x384xbf16>, vector<8x384xf32> -> vector<8x384xf32>
    %69 = vector.extract_strided_slice %66 {offsets = [0, 0], sizes = [8, 128], strides = [1, 1]} : vector<8x384xf32> to vector<8x128xf32>
    %70 = vector.extract_strided_slice %68 {offsets = [0, 0], sizes = [8, 128], strides = [1, 1]} : vector<8x384xf32> to vector<8x128xf32>
    %71 = arith.addf %69, %70 : vector<8x128xf32>
    %cst_35 = arith.constant 5.000000e-01 : f32
    %72 = vector.broadcast %cst_35 : f32 to vector<8x128xf32>
    %73 = arith.mulf %72, %71 : vector<8x128xf32>
    %74 = math.tanh %73 : vector<8x128xf32>
    %cst_36 = arith.constant 1.000000e+00 : f32
    %75 = vector.broadcast %cst_36 : f32 to vector<8x128xf32>
    %76 = arith.addf %75, %74 : vector<8x128xf32>
    %cst_37 = arith.constant 5.000000e-01 : f32
    %77 = vector.broadcast %cst_37 : f32 to vector<8x128xf32>
    %78 = arith.mulf %77, %76 : vector<8x128xf32>
    %79 = vector.extract_strided_slice %66 {offsets = [0, 128], sizes = [8, 128], strides = [1, 1]} : vector<8x384xf32> to vector<8x128xf32>
    %80 = vector.extract_strided_slice %68 {offsets = [0, 128], sizes = [8, 128], strides = [1, 1]} : vector<8x384xf32> to vector<8x128xf32>
    %81 = arith.addf %79, %80 : vector<8x128xf32>
    %cst_38 = arith.constant 5.000000e-01 : f32
    %82 = vector.broadcast %cst_38 : f32 to vector<8x128xf32>
    %83 = arith.mulf %82, %81 : vector<8x128xf32>
    %84 = math.tanh %83 : vector<8x128xf32>
    %cst_39 = arith.constant 1.000000e+00 : f32
    %85 = vector.broadcast %cst_39 : f32 to vector<8x128xf32>
    %86 = arith.addf %85, %84 : vector<8x128xf32>
    %cst_40 = arith.constant 5.000000e-01 : f32
    %87 = vector.broadcast %cst_40 : f32 to vector<8x128xf32>
    %88 = arith.mulf %87, %86 : vector<8x128xf32>
    %89 = vector.extract_strided_slice %66 {offsets = [0, 256], sizes = [8, 128], strides = [1, 1]} : vector<8x384xf32> to vector<8x128xf32>
    %90 = vector.extract_strided_slice %68 {offsets = [0, 256], sizes = [8, 128], strides = [1, 1]} : vector<8x384xf32> to vector<8x128xf32>
    %91 = arith.addf %90, %18 : vector<8x128xf32>
    %92 = arith.mulf %78, %91 : vector<8x128xf32>
    %93 = arith.addf %89, %92 : vector<8x128xf32>
    %94 = math.tanh %93 : vector<8x128xf32>
    %cst_41 = arith.constant 1.000000e+00 : f32
    %95 = vector.broadcast %cst_41 : f32 to vector<8x128xf32>
    %96 = arith.subf %95, %88 : vector<8x128xf32>
    %97 = arith.mulf %96, %94 : vector<8x128xf32>
    %98 = arith.mulf %88, %20 : vector<8x128xf32>
    %99 = arith.addf %97, %98 : vector<8x128xf32>
    %c3_i32 = arith.constant 3 : i32
    %100 = arith.muli %arg0, %c3_i32 : i32
    %101 = arith.addi %100, %c0_i32_20 : i32
    %c2_i32_42 = arith.constant 2 : i32
    %102 = arith.subi %c2_i32_42, %arg0 : i32
    %c3_i32_43 = arith.constant 3 : i32
    %103 = arith.muli %102, %c3_i32_43 : i32
    %104 = arith.addi %103, %21 : i32
    %c8_i32 = arith.constant 8 : i32
    %105 = arith.cmpi slt, %101, %c8_i32 : i32
    %106 = arith.select %105, %60, %19 : vector<8x128xf32>
    %c8_i32_44 = arith.constant 8 : i32
    %107 = arith.cmpi slt, %104, %c8_i32_44 : i32
    %108 = arith.select %107, %99, %20 : vector<8x128xf32>
    %109 = arith.index_cast %c0_i32_20 : i32 to index
    %c0_45 = arith.constant 0 : index
    %c0_46 = arith.constant 0 : index
    %110 = vector.load %arg11[%109, %c0_45, %c0_46] : memref<3x8x128xf32, #tpu.memory_space<vmem>>, vector<1x8x128xf32>
    %111 = vector.shape_cast %110 : vector<1x8x128xf32> to vector<8x128xf32>
    %112 = vector.shape_cast %106 : vector<8x128xf32> to vector<1x8x128xf32>
    tpu.vector_store %arg11[%109, %c0_45, %c0_46], %112 {strides = array<i32>} : memref<3x8x128xf32, #tpu.memory_space<vmem>>, vector<1x8x128xf32>,
    %113 = arith.index_cast %21 : i32 to index
    %c0_47 = arith.constant 0 : index
    %c0_48 = arith.constant 0 : index
    %114 = vector.load %arg12[%113, %c0_47, %c0_48] : memref<3x8x128xf32, #tpu.memory_space<vmem>>, vector<1x8x128xf32>
    %115 = vector.shape_cast %114 : vector<1x8x128xf32> to vector<8x128xf32>
    %116 = vector.shape_cast %108 : vector<8x128xf32> to vector<1x8x128xf32>
    tpu.vector_store %arg12[%113, %c0_47, %c0_48], %116 {strides = array<i32>} : memref<3x8x128xf32, #tpu.memory_space<vmem>>, vector<1x8x128xf32>,
    %c1_i32 = arith.constant 1 : i32
    %c2_i32_49 = arith.constant 2 : i32
    %117 = arith.subi %c2_i32_49, %c1_i32 : i32
    %118 = arith.index_cast %c1_i32 : i32 to index
    %c0_50 = arith.constant 0 : index
    %c0_51 = arith.constant 0 : index
    %119 = vector.load %arg1[%118, %c0_50, %c0_51] : memref<3x8x16xf32, #tpu.memory_space<vmem>>, vector<1x8x16xf32>
    %120 = vector.shape_cast %119 : vector<1x8x16xf32> to vector<8x16xf32>
    %121 = arith.truncf %120 : vector<8x16xf32> to vector<8x16xbf16>
    %cst_52 = arith.constant dense<0.000000e+00> : vector<8x384xf32>
    %122 = tpu.matmul %121, %3, %cst_52 {dimension_numbers = #tpu.dot_dimension_numbers<[1], [0], [0], [1], [0, 0, 1, 1], [], []>} : vector<8x16xbf16>, vector<16x384xbf16>, vector<8x384xf32> -> vector<8x384xf32>
    %123 = arith.addf %122, %9 : vector<8x384xf32>
    %124 = arith.truncf %106 : vector<8x128xf32> to vector<8x128xbf16>
    %cst_53 = arith.constant dense<0.000000e+00> : vector<8x384xf32>
    %125 = tpu.matmul %124, %5, %cst_53 {dimension_numbers = #tpu.dot_dimension_numbers<[1], [0], [0], [1], [0, 0, 1, 1], [], []>} : vector<8x128xbf16>, vector<128x384xbf16>, vector<8x384xf32> -> vector<8x384xf32>
    %126 = vector.extract_strided_slice %123 {offsets = [0, 0], sizes = [8, 128], strides = [1, 1]} : vector<8x384xf32> to vector<8x128xf32>
    %127 = vector.extract_strided_slice %125 {offsets = [0, 0], sizes = [8, 128], strides = [1, 1]} : vector<8x384xf32> to vector<8x128xf32>
    %128 = arith.addf %126, %127 : vector<8x128xf32>
    %cst_54 = arith.constant 5.000000e-01 : f32
    %129 = vector.broadcast %cst_54 : f32 to vector<8x128xf32>
    %130 = arith.mulf %129, %128 : vector<8x128xf32>
    %131 = math.tanh %130 : vector<8x128xf32>
    %cst_55 = arith.constant 1.000000e+00 : f32
    %132 = vector.broadcast %cst_55 : f32 to vector<8x128xf32>
    %133 = arith.addf %132, %131 : vector<8x128xf32>
    %cst_56 = arith.constant 5.000000e-01 : f32
    %134 = vector.broadcast %cst_56 : f32 to vector<8x128xf32>
    %135 = arith.mulf %134, %133 : vector<8x128xf32>
    %136 = vector.extract_strided_slice %123 {offsets = [0, 128], sizes = [8, 128], strides = [1, 1]} : vector<8x384xf32> to vector<8x128xf32>
    %137 = vector.extract_strided_slice %125 {offsets = [0, 128], sizes = [8, 128], strides = [1, 1]} : vector<8x384xf32> to vector<8x128xf32>
    %138 = arith.addf %136, %137 : vector<8x128xf32>
    %cst_57 = arith.constant 5.000000e-01 : f32
    %139 = vector.broadcast %cst_57 : f32 to vector<8x128xf32>
    %140 = arith.mulf %139, %138 : vector<8x128xf32>
    %141 = math.tanh %140 : vector<8x128xf32>
    %cst_58 = arith.constant 1.000000e+00 : f32
    %142 = vector.broadcast %cst_58 : f32 to vector<8x128xf32>
    %143 = arith.addf %142, %141 : vector<8x128xf32>
    %cst_59 = arith.constant 5.000000e-01 : f32
    %144 = vector.broadcast %cst_59 : f32 to vector<8x128xf32>
    %145 = arith.mulf %144, %143 : vector<8x128xf32>
    %146 = vector.extract_strided_slice %123 {offsets = [0, 256], sizes = [8, 128], strides = [1, 1]} : vector<8x384xf32> to vector<8x128xf32>
    %147 = vector.extract_strided_slice %125 {offsets = [0, 256], sizes = [8, 128], strides = [1, 1]} : vector<8x384xf32> to vector<8x128xf32>
    %148 = arith.addf %147, %15 : vector<8x128xf32>
    %149 = arith.mulf %135, %148 : vector<8x128xf32>
    %150 = arith.addf %146, %149 : vector<8x128xf32>
    %151 = math.tanh %150 : vector<8x128xf32>
    %cst_60 = arith.constant 1.000000e+00 : f32
    %152 = vector.broadcast %cst_60 : f32 to vector<8x128xf32>
    %153 = arith.subf %152, %145 : vector<8x128xf32>
    %154 = arith.mulf %153, %151 : vector<8x128xf32>
    %155 = arith.mulf %145, %106 : vector<8x128xf32>
    %156 = arith.addf %154, %155 : vector<8x128xf32>
    %157 = arith.index_cast %117 : i32 to index
    %c0_61 = arith.constant 0 : index
    %c0_62 = arith.constant 0 : index
    %158 = vector.load %arg2[%157, %c0_61, %c0_62] : memref<3x8x16xf32, #tpu.memory_space<vmem>>, vector<1x8x16xf32>
    %159 = vector.shape_cast %158 : vector<1x8x16xf32> to vector<8x16xf32>
    %160 = arith.truncf %159 : vector<8x16xf32> to vector<8x16xbf16>
    %cst_63 = arith.constant dense<0.000000e+00> : vector<8x384xf32>
    %161 = tpu.matmul %160, %4, %cst_63 {dimension_numbers = #tpu.dot_dimension_numbers<[1], [0], [0], [1], [0, 0, 1, 1], [], []>} : vector<8x16xbf16>, vector<16x384xbf16>, vector<8x384xf32> -> vector<8x384xf32>
    %162 = arith.addf %161, %12 : vector<8x384xf32>
    %163 = arith.truncf %108 : vector<8x128xf32> to vector<8x128xbf16>
    %cst_64 = arith.constant dense<0.000000e+00> : vector<8x384xf32>
    %164 = tpu.matmul %163, %6, %cst_64 {dimension_numbers = #tpu.dot_dimension_numbers<[1], [0], [0], [1], [0, 0, 1, 1], [], []>} : vector<8x128xbf16>, vector<128x384xbf16>, vector<8x384xf32> -> vector<8x384xf32>
    %165 = vector.extract_strided_slice %162 {offsets = [0, 0], sizes = [8, 128], strides = [1, 1]} : vector<8x384xf32> to vector<8x128xf32>
    %166 = vector.extract_strided_slice %164 {offsets = [0, 0], sizes = [8, 128], strides = [1, 1]} : vector<8x384xf32> to vector<8x128xf32>
    %167 = arith.addf %165, %166 : vector<8x128xf32>
    %cst_65 = arith.constant 5.000000e-01 : f32
    %168 = vector.broadcast %cst_65 : f32 to vector<8x128xf32>
    %169 = arith.mulf %168, %167 : vector<8x128xf32>
    %170 = math.tanh %169 : vector<8x128xf32>
    %cst_66 = arith.constant 1.000000e+00 : f32
    %171 = vector.broadcast %cst_66 : f32 to vector<8x128xf32>
    %172 = arith.addf %171, %170 : vector<8x128xf32>
    %cst_67 = arith.constant 5.000000e-01 : f32
    %173 = vector.broadcast %cst_67 : f32 to vector<8x128xf32>
    %174 = arith.mulf %173, %172 : vector<8x128xf32>
    %175 = vector.extract_strided_slice %162 {offsets = [0, 128], sizes = [8, 128], strides = [1, 1]} : vector<8x384xf32> to vector<8x128xf32>
    %176 = vector.extract_strided_slice %164 {offsets = [0, 128], sizes = [8, 128], strides = [1, 1]} : vector<8x384xf32> to vector<8x128xf32>
    %177 = arith.addf %175, %176 : vector<8x128xf32>
    %cst_68 = arith.constant 5.000000e-01 : f32
    %178 = vector.broadcast %cst_68 : f32 to vector<8x128xf32>
    %179 = arith.mulf %178, %177 : vector<8x128xf32>
    %180 = math.tanh %179 : vector<8x128xf32>
    %cst_69 = arith.constant 1.000000e+00 : f32
    %181 = vector.broadcast %cst_69 : f32 to vector<8x128xf32>
    %182 = arith.addf %181, %180 : vector<8x128xf32>
    %cst_70 = arith.constant 5.000000e-01 : f32
    %183 = vector.broadcast %cst_70 : f32 to vector<8x128xf32>
    %184 = arith.mulf %183, %182 : vector<8x128xf32>
    %185 = vector.extract_strided_slice %162 {offsets = [0, 256], sizes = [8, 128], strides = [1, 1]} : vector<8x384xf32> to vector<8x128xf32>
    %186 = vector.extract_strided_slice %164 {offsets = [0, 256], sizes = [8, 128], strides = [1, 1]} : vector<8x384xf32> to vector<8x128xf32>
    %187 = arith.addf %186, %18 : vector<8x128xf32>
    %188 = arith.mulf %174, %187 : vector<8x128xf32>
    %189 = arith.addf %185, %188 : vector<8x128xf32>
    %190 = math.tanh %189 : vector<8x128xf32>
    %cst_71 = arith.constant 1.000000e+00 : f32
    %191 = vector.broadcast %cst_71 : f32 to vector<8x128xf32>
    %192 = arith.subf %191, %184 : vector<8x128xf32>
    %193 = arith.mulf %192, %190 : vector<8x128xf32>
    %194 = arith.mulf %184, %108 : vector<8x128xf32>
    %195 = arith.addf %193, %194 : vector<8x128xf32>
    %c3_i32_72 = arith.constant 3 : i32
    %196 = arith.muli %arg0, %c3_i32_72 : i32
    %197 = arith.addi %196, %c1_i32 : i32
    %c2_i32_73 = arith.constant 2 : i32
    %198 = arith.subi %c2_i32_73, %arg0 : i32
    %c3_i32_74 = arith.constant 3 : i32
    %199 = arith.muli %198, %c3_i32_74 : i32
    %200 = arith.addi %199, %117 : i32
    %c8_i32_75 = arith.constant 8 : i32
    %201 = arith.cmpi slt, %197, %c8_i32_75 : i32
    %202 = arith.select %201, %156, %106 : vector<8x128xf32>
    %c8_i32_76 = arith.constant 8 : i32
    %203 = arith.cmpi slt, %200, %c8_i32_76 : i32
    %204 = arith.select %203, %195, %108 : vector<8x128xf32>
    %205 = arith.index_cast %c1_i32 : i32 to index
    %c0_77 = arith.constant 0 : index
    %c0_78 = arith.constant 0 : index
    %206 = vector.load %arg11[%205, %c0_77, %c0_78] : memref<3x8x128xf32, #tpu.memory_space<vmem>>, vector<1x8x128xf32>
    %207 = vector.shape_cast %206 : vector<1x8x128xf32> to vector<8x128xf32>
    %208 = vector.shape_cast %202 : vector<8x128xf32> to vector<1x8x128xf32>
    tpu.vector_store %arg11[%205, %c0_77, %c0_78], %208 {strides = array<i32>} : memref<3x8x128xf32, #tpu.memory_space<vmem>>, vector<1x8x128xf32>,
    %209 = arith.index_cast %117 : i32 to index
    %c0_79 = arith.constant 0 : index
    %c0_80 = arith.constant 0 : index
    %210 = vector.load %arg12[%209, %c0_79, %c0_80] : memref<3x8x128xf32, #tpu.memory_space<vmem>>, vector<1x8x128xf32>
    %211 = vector.shape_cast %210 : vector<1x8x128xf32> to vector<8x128xf32>
    %212 = vector.shape_cast %204 : vector<8x128xf32> to vector<1x8x128xf32>
    tpu.vector_store %arg12[%209, %c0_79, %c0_80], %212 {strides = array<i32>} : memref<3x8x128xf32, #tpu.memory_space<vmem>>, vector<1x8x128xf32>,
    %c2_i32_81 = arith.constant 2 : i32
    %c2_i32_82 = arith.constant 2 : i32
    %213 = arith.subi %c2_i32_82, %c2_i32_81 : i32
    %214 = arith.index_cast %c2_i32_81 : i32 to index
    %c0_83 = arith.constant 0 : index
    %c0_84 = arith.constant 0 : index
    %215 = vector.load %arg1[%214, %c0_83, %c0_84] : memref<3x8x16xf32, #tpu.memory_space<vmem>>, vector<1x8x16xf32>
    %216 = vector.shape_cast %215 : vector<1x8x16xf32> to vector<8x16xf32>
    %217 = arith.truncf %216 : vector<8x16xf32> to vector<8x16xbf16>
    %cst_85 = arith.constant dense<0.000000e+00> : vector<8x384xf32>
    %218 = tpu.matmul %217, %3, %cst_85 {dimension_numbers = #tpu.dot_dimension_numbers<[1], [0], [0], [1], [0, 0, 1, 1], [], []>} : vector<8x16xbf16>, vector<16x384xbf16>, vector<8x384xf32> -> vector<8x384xf32>
    %219 = arith.addf %218, %9 : vector<8x384xf32>
    %220 = arith.truncf %202 : vector<8x128xf32> to vector<8x128xbf16>
    %cst_86 = arith.constant dense<0.000000e+00> : vector<8x384xf32>
    %221 = tpu.matmul %220, %5, %cst_86 {dimension_numbers = #tpu.dot_dimension_numbers<[1], [0], [0], [1], [0, 0, 1, 1], [], []>} : vector<8x128xbf16>, vector<128x384xbf16>, vector<8x384xf32> -> vector<8x384xf32>
    %222 = vector.extract_strided_slice %219 {offsets = [0, 0], sizes = [8, 128], strides = [1, 1]} : vector<8x384xf32> to vector<8x128xf32>
    %223 = vector.extract_strided_slice %221 {offsets = [0, 0], sizes = [8, 128], strides = [1, 1]} : vector<8x384xf32> to vector<8x128xf32>
    %224 = arith.addf %222, %223 : vector<8x128xf32>
    %cst_87 = arith.constant 5.000000e-01 : f32
    %225 = vector.broadcast %cst_87 : f32 to vector<8x128xf32>
    %226 = arith.mulf %225, %224 : vector<8x128xf32>
    %227 = math.tanh %226 : vector<8x128xf32>
    %cst_88 = arith.constant 1.000000e+00 : f32
    %228 = vector.broadcast %cst_88 : f32 to vector<8x128xf32>
    %229 = arith.addf %228, %227 : vector<8x128xf32>
    %cst_89 = arith.constant 5.000000e-01 : f32
    %230 = vector.broadcast %cst_89 : f32 to vector<8x128xf32>
    %231 = arith.mulf %230, %229 : vector<8x128xf32>
    %232 = vector.extract_strided_slice %219 {offsets = [0, 128], sizes = [8, 128], strides = [1, 1]} : vector<8x384xf32> to vector<8x128xf32>
    %233 = vector.extract_strided_slice %221 {offsets = [0, 128], sizes = [8, 128], strides = [1, 1]} : vector<8x384xf32> to vector<8x128xf32>
    %234 = arith.addf %232, %233 : vector<8x128xf32>
    %cst_90 = arith.constant 5.000000e-01 : f32
    %235 = vector.broadcast %cst_90 : f32 to vector<8x128xf32>
    %236 = arith.mulf %235, %234 : vector<8x128xf32>
    %237 = math.tanh %236 : vector<8x128xf32>
    %cst_91 = arith.constant 1.000000e+00 : f32
    %238 = vector.broadcast %cst_91 : f32 to vector<8x128xf32>
    %239 = arith.addf %238, %237 : vector<8x128xf32>
    %cst_92 = arith.constant 5.000000e-01 : f32
    %240 = vector.broadcast %cst_92 : f32 to vector<8x128xf32>
    %241 = arith.mulf %240, %239 : vector<8x128xf32>
    %242 = vector.extract_strided_slice %219 {offsets = [0, 256], sizes = [8, 128], strides = [1, 1]} : vector<8x384xf32> to vector<8x128xf32>
    %243 = vector.extract_strided_slice %221 {offsets = [0, 256], sizes = [8, 128], strides = [1, 1]} : vector<8x384xf32> to vector<8x128xf32>
    %244 = arith.addf %243, %15 : vector<8x128xf32>
    %245 = arith.mulf %231, %244 : vector<8x128xf32>
    %246 = arith.addf %242, %245 : vector<8x128xf32>
    %247 = math.tanh %246 : vector<8x128xf32>
    %cst_93 = arith.constant 1.000000e+00 : f32
    %248 = vector.broadcast %cst_93 : f32 to vector<8x128xf32>
    %249 = arith.subf %248, %241 : vector<8x128xf32>
    %250 = arith.mulf %249, %247 : vector<8x128xf32>
    %251 = arith.mulf %241, %202 : vector<8x128xf32>
    %252 = arith.addf %250, %251 : vector<8x128xf32>
    %253 = arith.index_cast %213 : i32 to index
    %c0_94 = arith.constant 0 : index
    %c0_95 = arith.constant 0 : index
    %254 = vector.load %arg2[%253, %c0_94, %c0_95] : memref<3x8x16xf32, #tpu.memory_space<vmem>>, vector<1x8x16xf32>
    %255 = vector.shape_cast %254 : vector<1x8x16xf32> to vector<8x16xf32>
    %256 = arith.truncf %255 : vector<8x16xf32> to vector<8x16xbf16>
    %cst_96 = arith.constant dense<0.000000e+00> : vector<8x384xf32>
    %257 = tpu.matmul %256, %4, %cst_96 {dimension_numbers = #tpu.dot_dimension_numbers<[1], [0], [0], [1], [0, 0, 1, 1], [], []>} : vector<8x16xbf16>, vector<16x384xbf16>, vector<8x384xf32> -> vector<8x384xf32>
    %258 = arith.addf %257, %12 : vector<8x384xf32>
    %259 = arith.truncf %204 : vector<8x128xf32> to vector<8x128xbf16>
    %cst_97 = arith.constant dense<0.000000e+00> : vector<8x384xf32>
    %260 = tpu.matmul %259, %6, %cst_97 {dimension_numbers = #tpu.dot_dimension_numbers<[1], [0], [0], [1], [0, 0, 1, 1], [], []>} : vector<8x128xbf16>, vector<128x384xbf16>, vector<8x384xf32> -> vector<8x384xf32>
    %261 = vector.extract_strided_slice %258 {offsets = [0, 0], sizes = [8, 128], strides = [1, 1]} : vector<8x384xf32> to vector<8x128xf32>
    %262 = vector.extract_strided_slice %260 {offsets = [0, 0], sizes = [8, 128], strides = [1, 1]} : vector<8x384xf32> to vector<8x128xf32>
    %263 = arith.addf %261, %262 : vector<8x128xf32>
    %cst_98 = arith.constant 5.000000e-01 : f32
    %264 = vector.broadcast %cst_98 : f32 to vector<8x128xf32>
    %265 = arith.mulf %264, %263 : vector<8x128xf32>
    %266 = math.tanh %265 : vector<8x128xf32>
    %cst_99 = arith.constant 1.000000e+00 : f32
    %267 = vector.broadcast %cst_99 : f32 to vector<8x128xf32>
    %268 = arith.addf %267, %266 : vector<8x128xf32>
    %cst_100 = arith.constant 5.000000e-01 : f32
    %269 = vector.broadcast %cst_100 : f32 to vector<8x128xf32>
    %270 = arith.mulf %269, %268 : vector<8x128xf32>
    %271 = vector.extract_strided_slice %258 {offsets = [0, 128], sizes = [8, 128], strides = [1, 1]} : vector<8x384xf32> to vector<8x128xf32>
    %272 = vector.extract_strided_slice %260 {offsets = [0, 128], sizes = [8, 128], strides = [1, 1]} : vector<8x384xf32> to vector<8x128xf32>
    %273 = arith.addf %271, %272 : vector<8x128xf32>
    %cst_101 = arith.constant 5.000000e-01 : f32
    %274 = vector.broadcast %cst_101 : f32 to vector<8x128xf32>
    %275 = arith.mulf %274, %273 : vector<8x128xf32>
    %276 = math.tanh %275 : vector<8x128xf32>
    %cst_102 = arith.constant 1.000000e+00 : f32
    %277 = vector.broadcast %cst_102 : f32 to vector<8x128xf32>
    %278 = arith.addf %277, %276 : vector<8x128xf32>
    %cst_103 = arith.constant 5.000000e-01 : f32
    %279 = vector.broadcast %cst_103 : f32 to vector<8x128xf32>
    %280 = arith.mulf %279, %278 : vector<8x128xf32>
    %281 = vector.extract_strided_slice %258 {offsets = [0, 256], sizes = [8, 128], strides = [1, 1]} : vector<8x384xf32> to vector<8x128xf32>
    %282 = vector.extract_strided_slice %260 {offsets = [0, 256], sizes = [8, 128], strides = [1, 1]} : vector<8x384xf32> to vector<8x128xf32>
    %283 = arith.addf %282, %18 : vector<8x128xf32>
    %284 = arith.mulf %270, %283 : vector<8x128xf32>
    %285 = arith.addf %281, %284 : vector<8x128xf32>
    %286 = math.tanh %285 : vector<8x128xf32>
    %cst_104 = arith.constant 1.000000e+00 : f32
    %287 = vector.broadcast %cst_104 : f32 to vector<8x128xf32>
    %288 = arith.subf %287, %280 : vector<8x128xf32>
    %289 = arith.mulf %288, %286 : vector<8x128xf32>
    %290 = arith.mulf %280, %204 : vector<8x128xf32>
    %291 = arith.addf %289, %290 : vector<8x128xf32>
    %c3_i32_105 = arith.constant 3 : i32
    %292 = arith.muli %arg0, %c3_i32_105 : i32
    %293 = arith.addi %292, %c2_i32_81 : i32
    %c2_i32_106 = arith.constant 2 : i32
    %294 = arith.subi %c2_i32_106, %arg0 : i32
    %c3_i32_107 = arith.constant 3 : i32
    %295 = arith.muli %294, %c3_i32_107 : i32
    %296 = arith.addi %295, %213 : i32
    %c8_i32_108 = arith.constant 8 : i32
    %297 = arith.cmpi slt, %293, %c8_i32_108 : i32
    %298 = arith.select %297, %252, %202 : vector<8x128xf32>
    %c8_i32_109 = arith.constant 8 : i32
    %299 = arith.cmpi slt, %296, %c8_i32_109 : i32
    %300 = arith.select %299, %291, %204 : vector<8x128xf32>
    %301 = arith.index_cast %c2_i32_81 : i32 to index
    %c0_110 = arith.constant 0 : index
    %c0_111 = arith.constant 0 : index
    %302 = vector.load %arg11[%301, %c0_110, %c0_111] : memref<3x8x128xf32, #tpu.memory_space<vmem>>, vector<1x8x128xf32>
    %303 = vector.shape_cast %302 : vector<1x8x128xf32> to vector<8x128xf32>
    %304 = vector.shape_cast %298 : vector<8x128xf32> to vector<1x8x128xf32>
    tpu.vector_store %arg11[%301, %c0_110, %c0_111], %304 {strides = array<i32>} : memref<3x8x128xf32, #tpu.memory_space<vmem>>, vector<1x8x128xf32>,
    %305 = arith.index_cast %213 : i32 to index
    %c0_112 = arith.constant 0 : index
    %c0_113 = arith.constant 0 : index
    %306 = vector.load %arg12[%305, %c0_112, %c0_113] : memref<3x8x128xf32, #tpu.memory_space<vmem>>, vector<1x8x128xf32>
    %307 = vector.shape_cast %306 : vector<1x8x128xf32> to vector<8x128xf32>
    %308 = vector.shape_cast %300 : vector<8x128xf32> to vector<1x8x128xf32>
    tpu.vector_store %arg12[%305, %c0_112, %c0_113], %308 {strides = array<i32>} : memref<3x8x128xf32, #tpu.memory_space<vmem>>, vector<1x8x128xf32>,
    %c3_i32_114 = arith.constant 3 : i32
    %c0_115 = arith.constant 0 : index
    %c0_116 = arith.constant 0 : index
    %309 = vector.load %arg14[%c0_115, %c0_116] : memref<8x128xf32, #tpu.memory_space<vmem>>, vector<8x128xf32>
    tpu.vector_store %arg14[%c0_115, %c0_116], %298 {strides = array<i32>} : memref<8x128xf32, #tpu.memory_space<vmem>>, vector<8x128xf32>,
    %c0_117 = arith.constant 0 : index
    %c0_118 = arith.constant 0 : index
    %310 = vector.load %arg15[%c0_117, %c0_118] : memref<8x128xf32, #tpu.memory_space<vmem>>, vector<8x128xf32>
    tpu.vector_store %arg15[%c0_117, %c0_118], %300 {strides = array<i32>} : memref<8x128xf32, #tpu.memory_space<vmem>>, vector<8x128xf32>,
    %c2_i32_119 = arith.constant 2 : i32
    %311 = arith.cmpi eq, %arg0, %c2_i32_119 : i32
    %312 = arith.extui %311 : i1 to i32
    %c0_i32_120 = arith.constant 0 : i32
    %313 = arith.cmpi ne, %312, %c0_i32_120 : i32
    scf.if %313 {
      %c0_121 = arith.constant 0 : index
      %c0_122 = arith.constant 0 : index
      %314 = vector.load %arg13[%c0_121, %c0_122] : memref<8x256xf32, #tpu.memory_space<vmem>>, vector<8x128xf32>
      tpu.vector_store %arg13[%c0_121, %c0_122], %298 {strides = array<i32>} : memref<8x256xf32, #tpu.memory_space<vmem>>, vector<8x128xf32>,
      %c0_123 = arith.constant 0 : index
      %c128 = arith.constant 128 : index
      %315 = vector.load %arg13[%c0_123, %c128] : memref<8x256xf32, #tpu.memory_space<vmem>>, vector<8x128xf32>
      tpu.vector_store %arg13[%c0_123, %c128], %300 {strides = array<i32>} : memref<8x256xf32, #tpu.memory_space<vmem>>, vector<8x128xf32>,
    } else {
    }
    return
  }
  func.func @transform_0(%arg0: i32) -> (i32, i32, i32) {
    %c0_i32 = arith.constant 0 : i32
    %c0_i32_0 = arith.constant 0 : i32
    %c0_i32_1 = arith.constant 0 : i32
    return %arg0, %c0_i32, %c0_i32_0 : i32, i32, i32
  }
  func.func @transform_1(%arg0: i32) -> (i32, i32, i32) {
    %c2_i32 = arith.constant 2 : i32
    %0 = arith.subi %c2_i32, %arg0 : i32
    %c0_i32 = arith.constant 0 : i32
    %c0_i32_0 = arith.constant 0 : i32
    %c0_i32_1 = arith.constant 0 : i32
    return %0, %c0_i32, %c0_i32_0 : i32, i32, i32
  }
  func.func @transform_2(%arg0: i32) -> (i32, i32) {
    %c0_i32 = arith.constant 0 : i32
    %c0_i32_0 = arith.constant 0 : i32
    %c0_i32_1 = arith.constant 0 : i32
    return %c0_i32, %c0_i32_0 : i32, i32
  }
  func.func @transform_3(%arg0: i32) -> (i32, i32) {
    %c0_i32 = arith.constant 0 : i32
    %c0_i32_0 = arith.constant 0 : i32
    %c0_i32_1 = arith.constant 0 : i32
    return %c0_i32, %c0_i32_0 : i32, i32
  }
  func.func @transform_4(%arg0: i32) -> (i32, i32) {
    %c0_i32 = arith.constant 0 : i32
    %c0_i32_0 = arith.constant 0 : i32
    %c0_i32_1 = arith.constant 0 : i32
    return %c0_i32, %c0_i32_0 : i32, i32
  }
  func.func @transform_5(%arg0: i32) -> (i32, i32) {
    %c0_i32 = arith.constant 0 : i32
    %c0_i32_0 = arith.constant 0 : i32
    %c0_i32_1 = arith.constant 0 : i32
    return %c0_i32, %c0_i32_0 : i32, i32
  }
  func.func @transform_6(%arg0: i32) -> (i32, i32) {
    %c0_i32 = arith.constant 0 : i32
    %c0_i32_0 = arith.constant 0 : i32
    %c0_i32_1 = arith.constant 0 : i32
    return %c0_i32, %c0_i32_0 : i32, i32
  }
  func.func @transform_7(%arg0: i32) -> (i32, i32) {
    %c0_i32 = arith.constant 0 : i32
    %c0_i32_0 = arith.constant 0 : i32
    %c0_i32_1 = arith.constant 0 : i32
    return %c0_i32, %c0_i32_0 : i32, i32
  }
  func.func @transform_8(%arg0: i32) -> (i32, i32) {
    %c0_i32 = arith.constant 0 : i32
    %c0_i32_0 = arith.constant 0 : i32
    %c0_i32_1 = arith.constant 0 : i32
    return %c0_i32, %c0_i32_0 : i32, i32
  }
  func.func @transform_9(%arg0: i32) -> (i32, i32) {
    %c0_i32 = arith.constant 0 : i32
    %c0_i32_0 = arith.constant 0 : i32
    %c0_i32_1 = arith.constant 0 : i32
    return %c0_i32, %c0_i32_0 : i32, i32
  }
  func.func @transform_10(%arg0: i32) -> (i32, i32, i32) {
    %c0_i32 = arith.constant 0 : i32
    %c0_i32_0 = arith.constant 0 : i32
    %c0_i32_1 = arith.constant 0 : i32
    return %arg0, %c0_i32, %c0_i32_0 : i32, i32, i32
  }
  func.func @transform_11(%arg0: i32) -> (i32, i32, i32) {
    %c2_i32 = arith.constant 2 : i32
    %0 = arith.subi %c2_i32, %arg0 : i32
    %c0_i32 = arith.constant 0 : i32
    %c0_i32_0 = arith.constant 0 : i32
    %c0_i32_1 = arith.constant 0 : i32
    return %0, %c0_i32, %c0_i32_0 : i32, i32, i32
  }
  func.func @transform_12(%arg0: i32) -> (i32, i32) {
    %c0_i32 = arith.constant 0 : i32
    %c0_i32_0 = arith.constant 0 : i32
    %c0_i32_1 = arith.constant 0 : i32
    return %c0_i32, %c0_i32_0 : i32, i32
  }
}

</mosaic_0001>

<bundles_post_ra>
// kernel: tpu_custom_call.1
= control target key start
LH: loop header
LB: loop body
LE: loop exit
PB: predicated region body
PF: predicated region fallthrough
CT: control target
= control target key end

     0   :  { %s4397_s0 = inlined_call_operand.hbm [shape: f32[9,8,16], index: 0, kind: input, shape index: {}]   ;;  %s4398_s1 = inlined_call_operand.hbm [shape: f32[9,8,16], index: 1, kind: input, shape index: {}]   ;;  %s4399_s2 = inlined_call_operand.hbm [shape: bf16[16,384], index: 2, kind: input, shape index: {}]   ;;  %s4400_s3 = inlined_call_operand.hbm [shape: bf16[16,384], index: 3, kind: input, shape index: {}]   ;;  %s4401_s4 = inlined_call_operand.hbm [shape: bf16[128,384], index: 4, kind: input, shape index: {}]   ;;  %s4402_s5 = inlined_call_operand.hbm [shape: bf16[128,384], index: 5, kind: input, shape index: {}]   ;;  %s4403_s6 = inlined_call_operand.vmem [shape: f32[1,384], index: 6, kind: input, shape index: {}]   ;;  %s4404_s7 = inlined_call_operand.vmem [shape: f32[1,384], index: 7, kind: input, shape index: {}]   ;;  %s4405_s8 = inlined_call_operand.vmem [shape: f32[1,128], index: 8, kind: input, shape index: {}]   ;;  %s4406_s9 = inlined_call_operand.vmem [shape: f32[1,128], index: 9, kind: input, shape index: {}]   ;;  %s4407_s10 = inlined_call_operand.hbm [shape: f32[9,8,128], index: 10, kind: output, shape index: {0}]   ;;  %s4408_s11 = inlined_call_operand.hbm [shape: f32[9,8,128], index: 11, kind: output, shape index: {1}]   ;;  %s4409_s12 = inlined_call_operand.hbm [shape: f32[8,256], index: 12, kind: output, shape index: {2}]  }
   0x1   :  { %4448 = sst [smem:[#allocation43_spill]] %s4397_s0 }
   0x2   :  { %4449 = sst [smem:[#allocation44_spill]] %s4398_s1 }
   0x3   :  { %4450 = sst [smem:[#allocation45_spill]] %s4399_s2 }
   0x4   :  { %4451 = sst [smem:[#allocation46_spill]] %s4400_s3 }
   0x5   :  { %4452 = sst [smem:[#allocation47_spill]] %s4401_s4 }
   0x6   :  { %4453 = sst [smem:[#allocation48_spill]] %s4402_s5 }
   0x7   :  { %4454 = sst [smem:[#allocation49_spill]] %s4403_s6 }
   0x8   :  { %4455 = sst [smem:[#allocation50_spill]] %s4404_s7 }
   0x9   :  { %4456 = sst [smem:[#allocation51_spill]] %s4405_s8 }
   0xa   :  { %4457 = sst [smem:[#allocation52_spill]] %s4406_s9 }
   0xb   :  { %4458 = sst [smem:[#allocation53_spill]] %s4407_s10 }
   0xc   :  { %4459 = sst [smem:[#allocation54_spill]] %s4408_s11 }
   0xd   :  { %4460 = sst [smem:[#allocation55_spill]] %s4409_s12 }
   0xe   :  { %18 = vsyncpa [#allocation5], 0 }
   0xf   :  { %20 = vsyncpa [#allocation5 + $0x1], 0 }
  0x10   :  { %21 = vsyncpa [#allocation8], 0 }
  0x11   :  { %23 = vsyncpa [#allocation8 + $0x1], 0 }
  0x12   :  { %24 = vsyncpa [#allocation11], 0 }
  0x13   :  { %25 = vsyncpa [#allocation14], 0 }
  0x14   :  { %26 = vsyncpa [#allocation6], 0 }
  0x15   :  { %28 = vsyncpa [#allocation6 + $0x1], 0 }
  0x16   :  { %29 = vsyncpa [#allocation17], 0 }
  0x17   :  { %31 = vsyncpa [#allocation17 + $0x1], 0  ;;  %s3401_s21 = smov 0   ;;  %s3403_s22 = smov 0  }
  0x18   :  { %s3405_s23 = smov 0   ;;  %s3407_s24 = smov 0  }
  0x19   :  { %s3409_s25 = smov 0   ;;  %s3411_s26 = smov 0  }
  0x1a   :  { %s3413_s27 = smov 0  }
  0x1b LB: > { %s3437_s28 = sadd.s32 4294967295, %s3315_s27   ;;  %p4413_p0 = scmp.ne.s32.totalorder %s3295_s22, %s3291_s21  ;;  %s3315_s27 = sphi %s3413_s27, %s4553_s27   ;;  %s3311_s26 = sphi %s3411_s26, %s4552_s26   ;;  %s3307_s25 = sphi %s3409_s25, %s4551_s25   ;;  %s3303_s24 = sphi %s3407_s24, %s4550_s24   ;;  %s3299_s23 = sphi %s3405_s23, %s4549_s23   ;;  %s3295_s22 = sphi %s3403_s22, %s4548_s22   ;;  %s3291_s21 = sphi %s3401_s21, %s4547_s21  }
  0x1c   : > { %p4414_p1 = scmp.eq.s32.totalorder %s3437_s28, 0  ;;  %p2366_p3 = scmp.ge.s32.totalorder %s3315_s27, 1 }
  0x1d   : > { %p339_p4 = scmp.lt.s32.totalorder %s3315_s27, 4  ;;  %s3317_s13 = smov [#allocation9]  }
  0x1e   : > { %p3450_p5 = por %p4413_p0, %p4414_p1  ;;  %s351_s14 = sshll.u32 %s3317_s13, 4  ;;  %s352_s14 = int_to_ptr.vmem [resolvable:$true] %s351_s14 }
  0x1f   : > { %p3455_p7 = pnand %p2366_p3, %p339_p4  ;;  %s3318_s16 = smov [#allocation10]  }
  0x20   : > { %s4461_s29 = scalar_select %p3450_p5, 1, 0 }
  0x21   : > { %s4463_s30 = scalar_select %p3455_p7, 1, 0 }
  0x22   : > { %4462 = sst [smem:[#allocation27_spill]] %s4461_s29  ;;  %p2757_p8 = pneg %p3455_p7 }
  0x23   : > { %s364_s17 = sshll.u32 %s3318_s16, 4  ;;  %s4465_s2 = sld [smem:[#allocation45_spill]]  ;;  %s3467_s17 = int_to_ptr.vmem [resolvable:$true] %s364_s17 }
  0x24   : > { %p3463_p9 = pnand %p2757_p8, %p4414_p1 }
  0x26   : > { %p3477_p11 = pneg %p3463_p9 }
  0x29   : > { %s2975_s20 = scalar_lea.hbm %s4465_s2, 384 }
  0x2a   : > { %p2976_p10 = scmp.ne.s32.totalorder %s4465_s2, %s2975_s20  ;;  %p2982_p3 = scmp.lt.u32.totalorder %s2975_s20, %s4465_s2 }
  0x2c   : > { %p2978_p12 = pnand %p3477_p11, %p2976_p10 }
  0x2e   : > { %p2979_p13 = pneg %p2978_p12 }
  0x30   : > { %p2984_p4 = pnand %p2982_p3, %p2979_p13 }
  0x32   : > { %2987 = shalt.err (!%p2984_p4)
}
  0x33   : > { %s2988_s18 = scalar_lea.vmem %s352_s14, 384  ;;  %p2996_p1 = scmp.lt.s32.totalorder %s352_s14, %s352_s14 }
  0x34   : > { %p2989_p8 = scmp.ne.s32.totalorder %s352_s14, %s2988_s18  ;;  %p2997_p2 = scmp.lt.s32.totalorder %s2988_s18, %s2988_s18 }
  0x36   : > { %p2991_p6 = pnand %p2989_p8, %p3477_p11  ;;  %p2998_p5 = por %p2997_p2, %p2996_p1 }
  0x38   : > { %p2992_p0 = pneg %p2991_p6 }
  0x3a   : > { %p2999_p7 = pnand %p2998_p5, %p2992_p0 }
  0x3c   : > { %3002 = shalt.err (!%p2999_p7)
}
  0x3d   : > { %s3319_s10 = smov 192   ;;  %s3320_s12 = smov 12  }
  0x3e   : > { %2760 = dma.hbm_to_vmem [thread:$0]  (!%p3463_p9), %s4465_s2, 384, %s352_s14, [#allocation8], %s3319_s10, %s3319_s10, %s3320_s12  }
  0x3f   : > { %s4467_s3 = sld [smem:[#allocation46_spill]] }
  0x45   : > { %s3003_s9 = scalar_lea.hbm %s4467_s3, 384 }
  0x46   : > { %p3004_p0 = scmp.ne.s32.totalorder %s4467_s3, %s3003_s9  ;;  %p3010_p5 = scmp.lt.u32.totalorder %s3003_s9, %s4467_s3 }
  0x48   : > { %p3006_p1 = pnand %p3004_p0, %p3477_p11 }
  0x4a   : > { %p3007_p2 = pneg %p3006_p1 }
  0x4c   : > { %p3012_p6 = pnand %p3010_p5, %p3007_p2 }
  0x4e   : > { %3015 = shalt.err (!%p3012_p6)
}
  0x4f   : > { %s3016_s14 = scalar_lea.vmem %s3467_s17, 384  ;;  %p3024_p13 = scmp.lt.s32.totalorder %s3467_s17, %s3467_s17 }
  0x50   : > { %p3017_p7 = scmp.ne.s32.totalorder %s3467_s17, %s3016_s14  ;;  %p3025_p3 = scmp.lt.s32.totalorder %s3016_s14, %s3016_s14 }
  0x52   : > { %p3019_p10 = pnand %p3017_p7, %p3477_p11  ;;  %p3026_p4 = por %p3025_p3, %p3024_p13 }
  0x54   : > { %p3020_p12 = pneg %p3019_p10 }
  0x56   : > { %p3027_p8 = pnand %p3026_p4, %p3020_p12 }
  0x58   : > { %3030 = shalt.err (!%p3027_p8)
}
  0x59   : > { %2763 = dma.hbm_to_vmem [thread:$0]  (!%p3463_p9), %s4467_s3, 384, %s3467_s17, [#allocation11], %s3319_s10, %s3319_s10, %s3320_s12  }
  0x5a   : > { %s3321_s8 = smov [#allocation12]   ;;  %s3322_s11 = smov [#allocation13]  }
  0x5b   : > { %s377_s9 = sshll.u32 %s3321_s8, 4  ;;  %s390_s19 = sshll.u32 %s3322_s11, 4  ;;  %s378_s9 = int_to_ptr.vmem [resolvable:$true] %s377_s9  ;;  %s391_s19 = int_to_ptr.vmem [resolvable:$true] %s390_s19 }
  0x5c   : > { %s4468_s4 = sld [smem:[#allocation47_spill]] }
  0x62   : > { %s3031_s18 = scalar_lea.hbm %s4468_s4, 3072 }
  0x63   : > { %p3032_p0 = scmp.ne.s32.totalorder %s4468_s4, %s3031_s18  ;;  %p3038_p5 = scmp.lt.u32.totalorder %s3031_s18, %s4468_s4 }
  0x65   : > { %p3034_p1 = pnand %p3032_p0, %p3477_p11 }
  0x67   : > { %p3035_p2 = pneg %p3034_p1 }
  0x69   : > { %p3040_p6 = pnand %p3038_p5, %p3035_p2 }
  0x6b   : > { %3043 = shalt.err (!%p3040_p6)
}
  0x6c   : > { %s3044_s17 = scalar_lea.vmem %s378_s9, 3072  ;;  %p3052_p13 = scmp.lt.s32.totalorder %s378_s9, %s378_s9 }
  0x6d   : > { %p3045_p7 = scmp.ne.s32.totalorder %s378_s9, %s3044_s17  ;;  %p3053_p3 = scmp.lt.s32.totalorder %s3044_s17, %s3044_s17 }
  0x6f   : > { %p3047_p10 = pnand %p3045_p7, %p3477_p11  ;;  %p3054_p4 = por %p3053_p3, %p3052_p13 }
  0x71   : > { %p3048_p12 = pneg %p3047_p10 }
  0x73   : > { %p3055_p8 = pnand %p3054_p4, %p3048_p12 }
  0x75   : > { %3058 = shalt.err (!%p3055_p8)
}
  0x76   : > { %2766 = dma.hbm_to_vmem [thread:$0]  (!%p3463_p9), %s4468_s4, 3072, %s378_s9, [#allocation11], %s3319_s10, %s3319_s10, %s3320_s12  }
  0x77   : > { %s4469_s5 = sld [smem:[#allocation48_spill]] }
  0x7d   : > { %s3059_s11 = scalar_lea.hbm %s4469_s5, 3072 }
  0x7e   : > { %p3060_p0 = scmp.ne.s32.totalorder %s4469_s5, %s3059_s11  ;;  %p3066_p5 = scmp.lt.u32.totalorder %s3059_s11, %s4469_s5 }
  0x80   : > { %p3062_p1 = pnand %p3060_p0, %p3477_p11 }
  0x82   : > { %p3063_p2 = pneg %p3062_p1 }
  0x84   : > { %p3068_p6 = pnand %p3066_p5, %p3063_p2 }
  0x86   : > { %3071 = shalt.err (!%p3068_p6)
}
  0x87   : > { %s3072_s6 = scalar_lea.vmem %s391_s19, 3072  ;;  %p3080_p13 = scmp.lt.s32.totalorder %s391_s19, %s391_s19 }
  0x88   : > { %p3073_p7 = scmp.ne.s32.totalorder %s391_s19, %s3072_s6  ;;  %p3081_p3 = scmp.lt.s32.totalorder %s3072_s6, %s3072_s6 }
  0x8a   : > { %p3075_p10 = pnand %p3073_p7, %p3477_p11  ;;  %p3082_p4 = por %p3081_p3, %p3080_p13 }
  0x8c   : > { %p3076_p12 = pneg %p3075_p10 }
  0x8e   : > { %p3083_p8 = pnand %p3082_p4, %p3076_p12 }
  0x90   : > { %3086 = shalt.err (!%p3083_p8)
}
  0x91   : > { %2769 = dma.hbm_to_vmem [thread:$0]  (!%p3463_p9), %s4469_s5, 3072, %s391_s19, [#allocation14], %s3319_s10, %s3319_s10, %s3320_s12  }
  0x92   : > { %s4419_s15 = sadd.s32 4294967294, %s3315_s27   ;;  %s44_s13 = sadd.s32 1, %s3311_s26 }
  0x93   : > { %p51_p11 = scmp.ne.s32.totalorder %s3311_s26, %s3307_s25  ;;  %p4421_p0 = scmp.eq.s32.totalorder %s3315_s27, 0 }
  0x94   : > { %p57_p1 = scmp.ne.s32.totalorder %s3307_s25, %s3303_s24  ;;  %p4470_p2 = scmp.eq.s32.totalorder %s3437_s28, 2 }
  0x95   : > { %p283_p6 = scmp.eq.s32.totalorder %s4419_s15, 2  ;;  %p53_p7 = por %p4421_p0, %p51_p11 }
  0x96   : > { %p3573_p5 = por %p4470_p2, %p51_p11  ;;  %p4472_p10 = scmp.eq.s32.totalorder %s3437_s28, 0 }
  0x97   : > { %p3587_p9 = por %p283_p6, %p57_p1  ;;  %p4475_p13 = scmp.ne.s32.totalorder %s3295_s22, %s3291_s21 }
  0x98   : > { %s4471_s2 = scalar_select %p3573_p5, 1, 0 }
  0x99   : > { %p3583_p12 = por %p4472_p10, %p57_p1  ;;  %p3594_p3 = por %p283_p6, %p4475_p13 }
  0x9a   : > { %s4474_s10 = scalar_select %p3587_p9, 1, 0 }
  0x9b   : > { %s4476_s12 = scalar_select %p3594_p3, 1, 0 }
  0x9c   : > { %p4420_p4 = scmp.lt.s32.totalorder %s3315_s27, 3  ;;  %s416_s19 = sand.u32 1, %s3311_s26  }
  0x9d   : > { %s2725_s7 = smul.u32 24, %s416_s19  ;;  %s4478_s0 = sld [smem:[#allocation43_spill]] }
  0x9e   : > { %s2463_s8 = smul.u32 384, %s3315_s27  ;;  %p3603_p8 = pnand %p4420_p4, %p53_p7 }
  0x9f   : > { %s420_s21 = scalar_lea.vmem [#allocation4], %s2725_s7  ;;  %s3614_s6 = scalar_lea.sflag [#allocation5], %s416_s19 }
  0xa0   : > { %s427_s14 = sshll.u32 %s420_s21, 4  ;;  %p3089_p1 = pneg %p3603_p8  ;;  %s3612_s14 = int_to_ptr.vmem [resolvable:$true] %s427_s14 }
  0xa3   : > { %s3610_s18 = scalar_lea.hbm %s4478_s0, %s2463_s8  ;;  %s3092_s20 = scalar_lea.hbm %s4478_s0, 1152 }
  0xa4   : > { %s3087_s9 = scalar_lea.hbm %s3610_s18, 384  ;;  %p3093_p7 = scmp.lt.u32.totalorder %s3610_s18, %s4478_s0 }
  0xa5   : > { %p3088_p11 = scmp.ne.s32.totalorder %s3610_s18, %s3087_s9  ;;  %p3094_p10 = scmp.lt.u32.totalorder %s3092_s20, %s3087_s9 }
  0xa6   : > { %p3096_p4 = scmp.lt.u32.totalorder %s3087_s9, %s3610_s18 }
  0xa7   : > { %p3090_p2 = pnand %p3089_p1, %p3088_p11  ;;  %p3095_p13 = por %p3094_p10, %p3093_p7 }
  0xa9   : > { %p3091_p6 = pneg %p3090_p2  ;;  %p3097_p0 = por %p3096_p4, %p3095_p13 }
  0xab   : > { %p3098_p3 = pnand %p3097_p0, %p3091_p6 }
  0xad   : > { %3101 = shalt.err (!%p3098_p3)
}
  0xae   : > { %s3102_s19 = scalar_lea.vmem %s3612_s14, 384  ;;  %s3323_s7 = smov [#allocation4]  }
  0xaf   : > { %p3103_p11 = scmp.ne.s32.totalorder %s3612_s14, %s3102_s19  ;;  %s3107_s21 = sshll.u32 %s3323_s7, 4  ;;  %s3108_s21 = int_to_ptr.vmem [resolvable:$false] %s3107_s21 }
  0xb0   : > { %s3109_s15 = scalar_lea.vmem %s3108_s21, 768  ;;  %p3110_p5 = scmp.lt.s32.totalorder %s3612_s14, %s3108_s21 }
  0xb1   : > { %p3105_p2 = pnand %p3103_p11, %p3089_p1  ;;  %p3111_p7 = scmp.lt.s32.totalorder %s3109_s15, %s3102_s19 }
  0xb3   : > { %p3106_p9 = pneg %p3105_p2  ;;  %p3112_p10 = por %p3111_p7, %p3110_p5 }
  0xb5   : > { %p3113_p4 = pnand %p3112_p10, %p3106_p9 }
  0xb7   : > { %3116 = shalt.err (!%p3113_p4)
}
  0xb8   : > { %s4423_s9 = smov 128   ;;  %s4424_s17 = smov 8  }
  0xb9   : > { %2773 = dma.hbm_to_vmem [thread:$0]  (!%p3603_p8), %s3610_s18, 384, %s3612_s14, %s3614_s6, %s4423_s9, %s4423_s9, %s4424_s17  }
  0xba   : > { %s3646_s8 = sadd.s32 1, %s3315_s27   ;;  %s67_s16 = ssub.s32 2, %s3315_s27 }
  0xbb   : > { %s41_s20 = ssub.s32 %s3315_s27, %s3646_s8  ;;  %s68_s19 = ssub.s32 2, %s3646_s8 }
  0xbc   : > { %p42_p0 = scmp.eq.s32.totalorder %s41_s20, 0  ;;  %s69_s7 = ssub.s32 %s67_s16, %s68_s19 }
  0xbd   : > { %s72_s21 = sadd.s32 1, %s3299_s23  ;;  %p70_p5 = scmp.eq.s32.totalorder %s69_s7, 0 }
  0xbe   : > { %s3656_s15 = scalar_select %p42_p0, %s3311_s26, %s44_s13  }
  0xbf   : > { %p79_p9 = scmp.ne.s32.totalorder %s3299_s23, %s3295_s22  ;;  %s437_s11 = sand.u32 1, %s3315_s27  }
  0xc0   : > { %s439_s0 = sand.u32 1, %s3299_s23   ;;  %p4479_p3 = scmp.eq.s32.totalorder %s3315_s27, 0 }
  0xc1   : > { %s3663_s3 = scalar_select %p70_p5, %s3299_s23, %s72_s21  }
  0xc2   : > { %p81_p8 = por %p79_p9, %p4479_p3  ;;  %p4480_p1 = scmp.eq.s32.totalorder %s3437_s28, 2 }
  0xc3   : > { %s2726_s14 = smul.u32 24, %s439_s0  ;;  %p4482_p13 = scmp.lt.s32.totalorder %s3315_s27, 3 }
  0xc4   : > { %p3669_p6 = por %p4480_p1, %p79_p9  ;;  %s2464_s6 = smul.u32 384, %s67_s16 }
  0xc5   : > { %p3675_p11 = pnand %p4482_p13, %p81_p8  ;;  %s4484_s1 = sld [smem:[#allocation44_spill]] }
  0xc6   : > { %s4481_s18 = scalar_select %p3669_p6, 1, 0 }
  0xc7   : > { %s441_s21 = scalar_lea.vmem [#allocation7], %s2726_s14  ;;  %s3686_s0 = scalar_lea.sflag [#allocation8], %s437_s11 }
  0xc8   : > { %s449_s9 = sshll.u32 %s441_s21, 4  ;;  %p3119_p7 = pneg %p3675_p11  ;;  %s3684_s9 = int_to_ptr.vmem [resolvable:$true] %s449_s9 }
  0xcb   : > { %s3682_s7 = scalar_lea.hbm %s4484_s1, %s2464_s6  ;;  %s3122_s19 = scalar_lea.hbm %s4484_s1, 1152 }
  0xcc   : > { %s3117_s16 = scalar_lea.hbm %s3682_s7, 384  ;;  %p3123_p0 = scmp.lt.u32.totalorder %s3682_s7, %s4484_s1 }
  0xcd   : > { %p3118_p2 = scmp.ne.s32.totalorder %s3682_s7, %s3117_s16  ;;  %p3124_p5 = scmp.lt.u32.totalorder %s3122_s19, %s3117_s16 }
  0xce   : > { %p3126_p3 = scmp.lt.u32.totalorder %s3117_s16, %s3682_s7 }
  0xcf   : > { %p3120_p10 = pnand %p3119_p7, %p3118_p2  ;;  %p3125_p9 = por %p3124_p5, %p3123_p0 }
  0xd1   : > { %p3121_p4 = pneg %p3120_p10  ;;  %p3127_p8 = por %p3126_p3, %p3125_p9 }
  0xd3   : > { %p3128_p1 = pnand %p3127_p8, %p3121_p4 }
  0xd5   : > { %3131 = shalt.err (!%p3128_p1)
}
  0xd6   : > { %s3132_s11 = scalar_lea.vmem %s3684_s9, 384  ;;  %s3326_s14 = smov [#allocation7]  }
  0xd7   : > { %p3133_p13 = scmp.ne.s32.totalorder %s3684_s9, %s3132_s11  ;;  %s3137_s21 = sshll.u32 %s3326_s14, 4  ;;  %s3138_s21 = int_to_ptr.vmem [resolvable:$false] %s3137_s21 }
  0xd8   : > { %s3139_s4 = scalar_lea.vmem %s3138_s21, 768  ;;  %p3140_p6 = scmp.lt.s32.totalorder %s3684_s9, %s3138_s21 }
  0xd9   : > { %p3135_p2 = pnand %p3133_p13, %p3119_p7  ;;  %p3141_p0 = scmp.lt.s32.totalorder %s3139_s4, %s3132_s11 }
  0xdb   : > { %p3136_p10 = pneg %p3135_p2  ;;  %p3142_p5 = por %p3141_p0, %p3140_p6 }
  0xdd   : > { %p3143_p9 = pnand %p3142_p5, %p3136_p10 }
  0xdf   : > { %3146 = shalt.err (!%p3143_p9)
}
  0xe0   : > { %s4485_s17 = smov 8   ;;  %s4486_s16 = smov 128  }
  0xe1   : > { %2776 = dma.hbm_to_vmem [thread:$0]  (!%p3675_p11), %s3682_s7, 384, %s3684_s9, %s3686_s0, %s4486_s16, %s4486_s16, %s4485_s17  }
  0xe2   : > { %p4487_p7 = scmp.ne.s32.totalorder %s4463_s30, 0 }
  0xe4   : > { %461 = sbr.rel (%p4487_p7) target bundleno = 1191 (0x4a7), region = 60 }
  0xeb   : > { %s3720_s6 = sand.u32 1, %s3307_s25  }
  0xec   : > { %s2727_s13 = smul.u32 24, %s3720_s6  ;;  %s464_s19 = scalar_lea.sflag [#allocation5], %s3720_s6 }
  0xee   : > { %s3724_s11 = scalar_lea.vmem [#allocation4], %s2727_s13 }
  0xef   : > { %3258 = dma.done.wait (%p3583_p12), %s464_s19, 384  }
  0xf0   : > { %3260 = vsyncadd (%p3583_p12), %s464_s19, 4294966912  ;;  %s4488_s30 = sld [smem:[#allocation27_spill]]  ;;  %s472_s9 = sand.u32 1, %s3437_s28  }
  0xf1   : > { %s474_s20 = sand.u32 1, %s3295_s22   ;;  %s473_s0 = scalar_lea.sflag [#allocation8], %s472_s9 }
  0xf2   : > { %s2728_s7 = smul.u32 24, %s474_s20 }
  0xf4   : > { %s3734_s14 = scalar_lea.vmem [#allocation7], %s2728_s7 }
  0xf6   : > { %p4489_p6 = scmp.ne.s32.totalorder %s4488_s30, 0 }
  0xf8   : > { %3262 = dma.done.wait (%p4489_p6), %s473_s0, 384  }
  0xf9   : > { %3264 = vsyncadd (%p4489_p6), %s473_s0, 4294966912  ;;  %p4490_p11 = scmp.eq.s32.totalorder %s3437_s28, 0 }
  0xfb   : > { %3266 = dma.done.wait (%p4490_p11), [#allocation8], 384   ;;  %p4491_p12 = pmov %p4490_p11 }
  0xfc   : > { %p4492_p4 = pmov %p4490_p11 }
  0xfd   : > { %3268 = vsyncadd (%p4491_p12), [#allocation8], 4294966912 }
  0xfe   : > { %3270 = dma.done.wait (%p4492_p4), [#allocation11], 3456   ;;  %p4493_p3 = pmov %p4492_p4 }
 0x100   : > { %3272 = vsyncadd (%p4493_p3), [#allocation11], 4294963840  ;;  %p4494_p8 = pmov %p4493_p3 }
 0x101   : > { %p4495_p1 = pmov %p4493_p3 }
 0x102   : > { %3274 = dma.done.wait (%p4494_p8), [#allocation14], 3072  }
 0x103   : > { %3276 = vsyncadd (%p4495_p1), [#allocation14], 4294964224  ;;  %s3752_s29 = scalar_lea.vmem [#allocation15], %s2727_s13  ;;  %s3754_s21 = scalar_lea.vmem [#allocation16], %s2728_s7 }
 0x104   : > { %p4496_p13 = scmp.ne.s32.totalorder %s3437_s28, 0 }
 0x105   : > { %v3327_v0 = vmov (!%p4496_p13), 0.0  }
 0x106   : > { %553 = sbr.rel (%p4496_p13) target bundleno = 269 (0x10d), region = 88  ;;  %554 = vst [vmem:[#allocation2] sm:$0xff] (!%p4496_p13), %v3327_v0  ;;  %555 = vst [vmem:[#allocation3] sm:$0xff] (!%p4496_p13), %v3327_v0 }
 0x10d PF: > { %v3758_v1 = vld [vmem:[#allocation9 + $0x4] ss:$12 sps:$4 sm:$0xff]   ;;  %v3760_v2 = vld [vmem:[#allocation9] ss:$12 sps:$4 sm:$0xff]   ;;  %v4426_v3 = vmov 0   ;;  %v4433_v6 = vmov 0.0  }
 0x10e   : > { %732 = vmatprep.mubr.bf16.mxu0 %v4426_v3  ;;  %700 = vmatprep.subr.bf16.mxu0 %v3758_v1  ;;  %v3764_v4 = vld [vmem:[#allocation12 + $0x4] ss:$12 sps:$4 sm:$0xff]   ;;  %v3769_v7 = vld [vmem:[#allocation12] ss:$12 sps:$4 sm:$0xff]   ;;  %vm696_vm0 = vcmask 130048   ;;  %vm3330_vm1 = vmmov 0  }
 0x10f   : > { %v678_v5 = vld [vmem:[%s3724_s11] sm:$0xff]  ;;  %2533 = vmatprep.subr.bf16.mxu1 %v4433_v6  ;;  %701 = vmatpush1.bf16.msra.mxu0 %v3760_v2  ;;  %v3777_v10 = vld [vmem:[#allocation9 + $0x8] ss:$12 sps:$4 sm:$0xff]   ;;  %s4510_s16 = sld [smem:[#allocation49_spill]]  ;;  %s4513_s30 = sld [smem:[#allocation51_spill]] }
 0x110   : > { %v679_v8 = vpack.c.bf16 %v678_v5, %v678_v5  ;;  %2535 = vmatprep.mubr.msk.bf16.mxu1 %vm3330_vm1, %v4433_v6  ;;  %910 = vmatprep.subr.bf16.mxu0 %v3764_v4  ;;  %v3774_v9 = vld [vmem:[#allocation12 + $0x1c] ss:$12 sps:$4 sm:$0xff]   ;;  %v3780_v11 = vld [vmem:[#allocation12 + $0x18] ss:$12 sps:$4 sm:$0xff]   ;;  %v3784_v12 = vld [vmem:[#allocation12 + $0x34] ss:$12 sps:$4 sm:$0xff]  }
 0x111   : > { %2534 = vmatpush3.bf16.msra.mxu1 %v3777_v10  ;;  %v3788_v13 = vld [vmem:[#allocation12 + $0x8] ss:$12 sps:$4 sm:$0xff]   ;;  %v3791_v14 = vld [vmem:[#allocation12 + $0x30] ss:$12 sps:$4 sm:$0xff]   ;;  %v3793_v15 = vld [vmem:[#allocation12 + $0x4c] ss:$12 sps:$4 sm:$0xff]  }
 0x112   : > { %2385 = vmatmul.mubr.msk.bf16.vlgmr.msra.gmra.mrb[0].mxu0 %vm696_vm0, %v679_v8  ;;  %2539 = vmatprep.subr.bf16.mxu1 %v4433_v6  ;;  %v3798_v16 = vld [vmem:[#allocation12 + $0x20] ss:$12 sps:$4 sm:$0xff]   ;;  %v3803_v17 = vld [vmem:[#allocation12 + $0x48] ss:$12 sps:$4 sm:$0xff]   ;;  %v3806_v18 = vld [vmem:[#allocation12 + $0x64] ss:$12 sps:$4 sm:$0xff]  }
 0x113   : > { %911 = vmatpush1.bf16.msra.mxu0 %v3769_v7  ;;  %942 = vmatprep.mubr.bf16.mxu0 %v4426_v3  ;;  %4497 = vst [vmem:[#allocation28_spill] sm:$0xff] %v3806_v18  ;;  %v3810_v19 = vld [vmem:[#allocation12 + $0x38] ss:$12 sps:$4 sm:$0xff]   ;;  %v3814_v20 = vld [vmem:[#allocation12 + $0x60] ss:$12 sps:$4 sm:$0xff]   ;;  %s4039_s20 = smul.u32 3, %s3437_s28 }
 0x114   : > { %912 = vmatprep.subr.bf16.mxu0 %v3774_v9  ;;  %2536 = vmatmul.mubr.msk.bf16.vlgmr.msra.gmra.mrb[0].mxu1 %vm696_vm0, %v679_v8  ;;  %4498 = vst [vmem:[#allocation29_spill] sm:$0xff] %v3814_v20  ;;  %v3816_v21 = vld [vmem:[#allocation12 + $0x7c] ss:$12 sps:$4 sm:$0xff]   ;;  %v3824_v23 = vld [vmem:[#allocation12 + $0x78] ss:$12 sps:$4 sm:$0xff]   ;;  %s4514_s17 = sld [smem:[#allocation50_spill]] }
 0x115   : > { %2540 = vmatpush3.bf16.msra.mxu1 %v3788_v13  ;;  %2555 = vmatprep.mubr.msk.bf16.mxu1 %vm3330_vm1, %v4433_v6  ;;  %4499 = vst [vmem:[#allocation30_spill] sm:$0xff] %v3816_v21  ;;  %v3820_v22 = vld [vmem:[#allocation12 + $0x50] ss:$12 sps:$4 sm:$0xff]   ;;  %4500 = vst [vmem:[#allocation31_spill] sm:$0xff] %v3824_v23  ;;  %v3827_v24 = vld [vmem:[#allocation12 + $0x94] ss:$12 sps:$4 sm:$0xff]  }
 0x116   : > { %2541 = vmatprep.subr.bf16.mxu1 %v4433_v6  ;;  %4501 = vst [vmem:[#allocation32_spill] sm:$0xff] %v3827_v24  ;;  %v3830_v25 = vld [vmem:[#allocation12 + $0x68] ss:$12 sps:$4 sm:$0xff]   ;;  %v3833_v26 = vld [vmem:[#allocation12 + $0x90] ss:$12 sps:$4 sm:$0xff]   ;;  %v3845_v30 = vld [vmem:[#allocation2] sm:$0xff] }
 0x117   : > { %913 = vmatpush1.bf16.msra.mxu0 %v3780_v11  ;;  %4502 = vst [vmem:[#allocation33_spill] sm:$0xff] %v3830_v25  ;;  %4503 = vst [vmem:[#allocation34_spill] sm:$0xff] %v3833_v26  ;;  %v3836_v27 = vld [vmem:[#allocation12 + $0xac] ss:$12 sps:$4 sm:$0xff]   ;;  %v3843_v29 = vld [vmem:[#allocation12 + $0xa8] ss:$12 sps:$4 sm:$0xff]   ;;  %v781_v33 = vpack.c.bf16 %v3845_v30, %v3845_v30 }
 0x118   : > { %914 = vmatprep.subr.bf16.mxu0 %v3784_v12  ;;  %4504 = vst [vmem:[#allocation35_spill] sm:$0xff] %v3836_v27  ;;  %v3840_v28 = vld [vmem:[#allocation12 + $0x80] ss:$12 sps:$4 sm:$0xff]   ;;  %4506 = vst [vmem:[#allocation37_spill] sm:$0xff] %v3843_v29  ;;  %v3852_v32 = vld [vmem:[#allocation12 + $0x98] ss:$12 sps:$4 sm:$0xff]  }
 0x119   : > { %2542 = vmatpush3.bf16.msra.mxu1 %v3798_v16  ;;  %4505 = vst [vmem:[#allocation36_spill] sm:$0xff] %v3840_v28  ;;  %v3848_v31 = vld [vmem:[#allocation10 + $0x4] ss:$12 sps:$4 sm:$0xff]   ;;  %4508 = vst [vmem:[#allocation39_spill] sm:$0xff] %v3852_v32  ;;  %v3858_v34 = vld [vmem:[#allocation10] ss:$12 sps:$4 sm:$0xff]  }
 0x11a   : > { %2543 = vmatprep.subr.bf16.mxu1 %v4433_v6  ;;  %4507 = vst [vmem:[#allocation38_spill] sm:$0xff] %v3848_v31  ;;  %v3860_v35 = vld [vmem:[#allocation13 + $0x4] ss:$12 sps:$4 sm:$0xff]   ;;  %v3875_v40 = vld [vmem:[#allocation13] ss:$12 sps:$4 sm:$0xff]   ;;  %p1344_p2 = scmp.lt.s32.totalorder %s4039_s20, 8 }
 0x11b   : > { %915 = vmatpush1.bf16.msra.mxu0 %v3791_v14  ;;  %v3864_v36 = vld [vmem:[#allocation12 + $0xb0] ss:$12 sps:$4 sm:$0xff]   ;;  %v3885_v42 = vld [vmem:[#allocation13 + $0x18] ss:$12 sps:$4 sm:$0xff]   ;;  %v3889_v43 = vld [vmem:[#allocation13 + $0x34] ss:$12 sps:$4 sm:$0xff]  }
 0x11c   : > { %916 = vmatprep.subr.bf16.mxu0 %v3793_v15  ;;  %4509 = vst [vmem:[#allocation40_spill] sm:$0xff] %v3864_v36  ;;  %v2411_v37 = vld [vmem:[%s3734_s14 + $0x10] sm:$0xff]  ;;  %v3913_v50 = vld [vmem:[#allocation13 + $0x38] ss:$12 sps:$4 sm:$0xff]   ;;  %s1345_s7 = scalar_select %p1344_p2, 1, 0 }
 0x11d   : > { %2544 = vmatpush3.bf16.msra.mxu1 %v3810_v19  ;;  %v3872_v38 = vld [vmem:[#allocation10 + $0x8] ss:$12 sps:$4 sm:$0xff]   ;;  %v1011_v39 = vpack.c.bf16 %v2411_v37, %v2411_v37  ;;  %v3891_v44 = vld [vmem:[#allocation13 + $0x8] ss:$12 sps:$4 sm:$0xff]   ;;  %v3898_v46 = vld [vmem:[#allocation13 + $0x4c] ss:$12 sps:$4 sm:$0xff]  }
 0x11e   : > { %2545 = vmatprep.subr.bf16.mxu1 %v4433_v6  ;;  %v3877_v41 = vld [vmem:[#allocation13 + $0x1c] ss:$12 sps:$4 sm:$0xff]   ;;  %v3901_v47 = vld [vmem:[#allocation13 + $0x20] ss:$12 sps:$4 sm:$0xff]   ;;  %v3910_v49 = vld [vmem:[#allocation13 + $0x64] ss:$12 sps:$4 sm:$0xff]  }
 0x11f   : > { %917 = vmatpush1.bf16.msra.mxu0 %v3803_v17  ;;  %v3894_v45 = vld [vmem:[#allocation13 + $0x30] ss:$12 sps:$4 sm:$0xff]   ;;  %v3907_v48 = vld [vmem:[#allocation13 + $0x48] ss:$12 sps:$4 sm:$0xff]   ;;  %v3917_v51 = vld [vmem:[#allocation13 + $0x60] ss:$12 sps:$4 sm:$0xff]  }
 0x120   : > { %918 = vmatprep.subr.bf16.mxu0 %v3806_v18  ;;  %v3920_v52 = vld [vmem:[#allocation13 + $0x7c] ss:$12 sps:$4 sm:$0xff]   ;;  %v3927_v54 = vld [vmem:[#allocation13 + $0x78] ss:$12 sps:$4 sm:$0xff]   ;;  %v3930_v55 = vld [vmem:[#allocation13 + $0x94] ss:$12 sps:$4 sm:$0xff]  }
 0x121   : > { %2546 = vmatpush3.bf16.msra.mxu1 %v3820_v22  ;;  %v3923_v53 = vld [vmem:[#allocation13 + $0x50] ss:$12 sps:$4 sm:$0xff]   ;;  %v3933_v56 = vld [vmem:[#allocation13 + $0x68] ss:$12 sps:$4 sm:$0xff]   ;;  %v3940_v58 = vld [vmem:[#allocation13 + $0xac] ss:$12 sps:$4 sm:$0xff]  }
 0x122   : > { %2547 = vmatprep.subr.bf16.mxu1 %v4433_v6  ;;  %v3937_v57 = vld [vmem:[#allocation13 + $0x90] ss:$12 sps:$4 sm:$0xff]   ;;  %v3943_v59 = vld [vmem:[#allocation13 + $0x80] ss:$12 sps:$4 sm:$0xff]   ;;  %v3947_v60 = vld [vmem:[#allocation13 + $0xa8] ss:$12 sps:$4 sm:$0xff]  }
 0x123   : > { %919 = vmatpush1.bf16.msra.mxu0 %v3814_v20  ;;  %v3949_v61 = vld [vmem:[#allocation3] sm:$0xff]  ;;  %v3953_v62 = vld [vmem:[#allocation13 + $0x98] ss:$12 sps:$4 sm:$0xff]   ;;  %v3960_v0 = vld [vmem:[#allocation13 + $0xb0] ss:$12 sps:$4 sm:$0xff]   ;;  %s4517_s19 = sld [smem:[#allocation52_spill]] }
 0x124   : > { %920 = vmatprep.subr.bf16.mxu0 %v3816_v21  ;;  %v1112_v63 = vpack.c.bf16 %v3949_v61, %v3949_v61  ;;  %v2442_v5 = vld [vmem:[%s3724_s11 + $0x8] sm:$0xff]  ;;  %s2120_s13 = sadd.s32 2, %s4039_s20  ;;  %p2456_p6 = scmp.ne.s32.totalorder %s3437_s28, 2 }
 0x125   : > { %2548 = vmatpush3.bf16.msra.mxu1 %v3830_v25  ;;  %v1359_v8 = vpack.c.bf16 %v2442_v5, %v2442_v5  ;;  %v630_v5 = vlaneseq  ;;  %p2121_p9 = scmp.lt.s32.totalorder %s2120_s13, 8 }
 0x126   : > { %2549 = vmatprep.subr.bf16.mxu1 %v4433_v6 }
 0x127   : > { %921 = vmatpush1.bf16.msra.mxu0 %v3824_v23 }
 0x128   : > { %922 = vmatprep.subr.bf16.mxu0 %v3827_v24 }
 0x129   : > { %2550 = vmatpush3.bf16.msra.mxu1 %v3840_v28 }
 0x12a   : > { %2551 = vmatprep.subr.bf16.mxu1 %v4433_v6 }
 0x12b   : > { %923 = vmatpush1.bf16.msra.mxu0 %v3833_v26 }
 0x12c   : > { %924 = vmatprep.subr.bf16.mxu0 %v3836_v27 }
 0x12d   : > { %2552 = vmatpush3.bf16.msra.mxu1 %v3852_v32 }
 0x12e   : > { %2553 = vmatprep.subr.bf16.mxu1 %v4433_v6 }
 0x12f   : > { %925 = vmatpush1.bf16.msra.mxu0 %v3843_v29 }
 0x130   : > { %1031 = vmatprep.subr.bf16.mxu0 %v3848_v31 }
 0x131   : > { %2554 = vmatpush3.bf16.msra.mxu1 %v3864_v36 }
 0x132   : > { %943 = vmatmul.mubr.bf16.vlgmr.msra.gmra.mrb[0].mxu0 %v781_v33  ;;  %2559 = vmatprep.subr.bf16.mxu1 %v4433_v6 }
 0x133   : > { %1032 = vmatpush1.bf16.msra.mxu0 %v3858_v34  ;;  %1063 = vmatprep.mubr.bf16.mxu0 %v4426_v3 }
 0x134   : > { %1241 = vmatprep.subr.bf16.mxu0 %v3860_v35  ;;  %2556 = vmatmul.mubr.bf16.vlgmr.msra.gmra.mrb[4].mxu1 %v781_v33 }
 0x135   : > { %2560 = vmatpush3.bf16.msra.mxu1 %v3872_v38  ;;  %2561 = vmatprep.mubr.msk.bf16.mxu1 %vm3330_vm1, %v4433_v6 }
 0x136   : > { %2565 = vmatprep.subr.bf16.mxu1 %v4433_v6 }
 0x13a   : > { %2415 = vmatmul.mubr.msk.bf16.vlgmr.msra.gmra.mrb[4].mxu0 %vm696_vm0, %v1011_v39 }
 0x13b   : > { %1242 = vmatpush1.bf16.msra.mxu0 %v3875_v40  ;;  %1273 = vmatprep.mubr.bf16.mxu0 %v4426_v3 }
 0x13c   : > { %1243 = vmatprep.subr.bf16.mxu0 %v3877_v41  ;;  %2562 = vmatmul.mubr.msk.bf16.vlgmr.msra.gmra.mrb[8].mxu1 %vm696_vm0, %v1011_v39 }
 0x13d   : > { %2566 = vmatpush3.bf16.msra.mxu1 %v3891_v44  ;;  %2581 = vmatprep.mubr.msk.bf16.mxu1 %vm3330_vm1, %v4433_v6 }
 0x13e   : > { %2567 = vmatprep.subr.bf16.mxu1 %v4433_v6 }
 0x13f   : > { %1244 = vmatpush1.bf16.msra.mxu0 %v3885_v42 }
 0x140   : > { %1245 = vmatprep.subr.bf16.mxu0 %v3889_v43 }
 0x141   : > { %2568 = vmatpush3.bf16.msra.mxu1 %v3901_v47 }
 0x142   : > { %2569 = vmatprep.subr.bf16.mxu1 %v4433_v6 }
 0x143   : > { %1246 = vmatpush1.bf16.msra.mxu0 %v3894_v45 }
 0x144   : > { %1247 = vmatprep.subr.bf16.mxu0 %v3898_v46 }
 0x145   : > { %2570 = vmatpush3.bf16.msra.mxu1 %v3913_v50 }
 0x146   : > { %2571 = vmatprep.subr.bf16.mxu1 %v4433_v6 }
 0x147   : > { %1248 = vmatpush1.bf16.msra.mxu0 %v3907_v48 }
 0x148   : > { %1249 = vmatprep.subr.bf16.mxu0 %v3910_v49 }
 0x149   : > { %2572 = vmatpush3.bf16.msra.mxu1 %v3923_v53 }
 0x14a   : > { %2573 = vmatprep.subr.bf16.mxu1 %v4433_v6 }
 0x14b   : > { %1250 = vmatpush1.bf16.msra.mxu0 %v3917_v51 }
 0x14c   : > { %1251 = vmatprep.subr.bf16.mxu0 %v3920_v52 }
 0x14d   : > { %2574 = vmatpush3.bf16.msra.mxu1 %v3933_v56 }
 0x14e   : > { %2575 = vmatprep.subr.bf16.mxu1 %v4433_v6 }
 0x14f   : > { %1252 = vmatpush1.bf16.msra.mxu0 %v3927_v54 }
 0x150   : > { %1253 = vmatprep.subr.bf16.mxu0 %v3930_v55 }
 0x151   : > { %2576 = vmatpush3.bf16.msra.mxu1 %v3943_v59 }
 0x152   : > { %2577 = vmatprep.subr.bf16.mxu1 %v4433_v6 }
 0x153   : > { %1254 = vmatpush1.bf16.msra.mxu0 %v3937_v57 }
 0x154   : > { %1255 = vmatprep.subr.bf16.mxu0 %v3940_v58 }
 0x155   : > { %2578 = vmatpush3.bf16.msra.mxu1 %v3953_v62 }
 0x156   : > { %2579 = vmatprep.subr.bf16.mxu1 %v4433_v6 }
 0x157   : > { %1256 = vmatpush1.bf16.msra.mxu0 %v3947_v60 }
 0x158   : > { %1363 = vmatprep.subr.bf16.mxu0 %v3758_v1 }
 0x159   : > { %2580 = vmatpush3.bf16.msra.mxu1 %v3960_v0 }
 0x15a   : > { %1274 = vmatmul.mubr.bf16.vlgmr.msra.gmra.mrb[4].mxu0 %v1112_v63  ;;  %2585 = vmatprep.subr.bf16.mxu1 %v4433_v6 }
 0x15b   : > { %1364 = vmatpush1.bf16.msra.mxu0 %v3760_v2  ;;  %1395 = vmatprep.mubr.bf16.mxu0 %v4426_v3 }
 0x15c   : > { %1445 = vmatprep.subr.bf16.mxu0 %v3764_v4  ;;  %2582 = vmatmul.mubr.bf16.vlgmr.msra.gmra.mrb[12].mxu1 %v1112_v63 }
 0x15d   : > { %2586 = vmatpush3.bf16.msra.mxu1 %v3777_v10  ;;  %2587 = vmatprep.mubr.msk.bf16.mxu1 %vm3330_vm1, %v4433_v6 }
 0x15e   : > { %2591 = vmatprep.subr.bf16.mxu1 %v4433_v6 }
 0x162   : > { %2443 = vmatmul.mubr.msk.bf16.vlgmr.msra.gmra.mrb[8].mxu0 %vm696_vm0, %v1359_v8 }
 0x163   : > { %1446 = vmatpush1.bf16.msra.mxu0 %v3769_v7  ;;  %1477 = vmatprep.mubr.bf16.mxu0 %v4426_v3 }
 0x164   : > { %2588 = vmatmul.mubr.msk.bf16.vlgmr.msra.gmra.mrb[16].mxu1 %vm696_vm0, %v1359_v8  ;;  %1447 = vmatprep.subr.bf16.mxu0 %v3774_v9  ;;  %v4011_v8 = vshrl.u32 %v630_v5, 7 }
 0x165   : > { %2592 = vmatpush3.bf16.msra.mxu1 %v3788_v13  ;;  %2607 = vmatprep.mubr.msk.bf16.mxu1 %vm3330_vm1, %v4433_v6 }
 0x166   : > { %2593 = vmatprep.subr.bf16.mxu1 %v4433_v6  ;;  %v632_v3 = vsub.s32 0, %v4011_v8 }
 0x167   : > { %1448 = vmatpush1.bf16.msra.mxu0 %v3780_v11 }
 0x168   : > { %1449 = vmatprep.subr.bf16.mxu0 %v3784_v12 }
 0x169   : > { %2594 = vmatpush3.bf16.msra.mxu1 %v3798_v16 }
 0x16a   : > { %2595 = vmatprep.subr.bf16.mxu1 %v4433_v6 }
 0x16b   : > { %1450 = vmatpush1.bf16.msra.mxu0 %v3791_v14 }
 0x16c   : > { %1451 = vmatprep.subr.bf16.mxu0 %v3793_v15 }
 0x16d   : > { %2596 = vmatpush3.bf16.msra.mxu1 %v3810_v19 }
 0x16e   : > { %2597 = vmatprep.subr.bf16.mxu1 %v4433_v6 }
 0x16f   : > { %1452 = vmatpush1.bf16.msra.mxu0 %v3803_v17 }
 0x170   : > { %1453 = vmatprep.subr.bf16.mxu0 %v3806_v18 }
 0x171   : > { %2598 = vmatpush3.bf16.msra.mxu1 %v3820_v22 }
 0x172   : > { %2599 = vmatprep.subr.bf16.mxu1 %v4433_v6 }
 0x173   : > { %1454 = vmatpush1.bf16.msra.mxu0 %v3814_v20  ;;  %v4447_v20 = vsub.s32 2, %v4011_v8 }
 0x174   : > { %1455 = vmatprep.subr.bf16.mxu0 %v3816_v21 }
 0x175   : > { %2600 = vmatpush3.bf16.msra.mxu1 %v3830_v25 }
 0x176   : > { %2601 = vmatprep.subr.bf16.mxu1 %v4433_v6 }
 0x177   : > { %1456 = vmatpush1.bf16.msra.mxu0 %v3824_v23 }
 0x178   : > { %1457 = vmatprep.subr.bf16.mxu0 %v3827_v24 }
 0x179   : > { %2602 = vmatpush3.bf16.msra.mxu1 %v3840_v28 }
 0x17a   : > { %2603 = vmatprep.subr.bf16.mxu1 %v4433_v6 }
 0x17b   : > { %1458 = vmatpush1.bf16.msra.mxu0 %v3833_v26 }
 0x17c   : > { %1459 = vmatprep.subr.bf16.mxu0 %v3836_v27  ;;  %v628_v27 = vld [vmem:[%s4510_s16] sm:$0x7] }
 0x17d   : > { %2604 = vmatpush3.bf16.msra.mxu1 %v3852_v32 }
 0x17e   : > { %2605 = vmatprep.subr.bf16.mxu1 %v4433_v6 }
 0x17f   : > { %1460 = vmatpush1.bf16.msra.mxu0 %v3843_v29  ;;  %v636_v29 = vsub.s32 1, %v4011_v8 }
 0x180   : > { %1550 = vmatprep.subr.bf16.mxu0 %v3848_v31 }
 0x181   : > { %2606 = vmatpush3.bf16.msra.mxu1 %v3864_v36  ;;  %v4018_v36 = vrot.slane %v628_v27, %v632_v3  ;;  %v4020_v32 = vrot.slane %v628_v27, %v636_v29 }
 0x182   : > { %2611 = vmatprep.subr.bf16.mxu1 %v4433_v6 }
 0x183   : > { %4511 = vst [vmem:[#allocation41_spill] sm:$0xff] %v4018_v36  ;;  %4512 = vst [vmem:[#allocation42_spill] sm:$0xff] %v4020_v32 }
 0x1e7   : > { %v775_v33 = vpop.f32.mrb[0].mxu1 }
 0x1e8   : > { %v2537_v37 = vpop.f32.mrb[1].mxu1 }
 0x1e9   : > { %v778_v39 = vpop.f32.mrb[2].mxu1 }
 0x1ea   : > { %v2538_v63 = vpop.f32.mrb[3].mxu1 }
 0x205   : > { %v944_v31 = vpop.f32.mrb[0].mxu0 }
 0x206   : > { %v2689_v37 = vadd.f32 %v944_v31, %v4018_v36  ;;  %v946_v39 = vpop.f32.mrb[1].mxu0  ;;  %v4028_v31 = vld [vmem:[%s4513_s30] ss:$0 sm:$0xff]  ;;  %s1341_s30 = ssub.s32 2, %s3437_s28 }
 0x207   : > { %v948_v63 = vpop.f32.mrb[2].mxu0  ;;  %v2690_v26 = vadd.f32 %v946_v39, %v4020_v32  ;;  %v985_v24 = vpop.f32.mrb[4].mxu1 }
 0x208   : > { %v992_v6 = vmul.f32 0.5, %v2689_v37  ;;  %v949_v5 = vpop.f32.mrb[3].mxu0  ;;  %v2557_v28 = vpop.f32.mrb[5].mxu1 }
 0x209   : > { %v988_v23 = vpop.f32.mrb[6].mxu1  ;;  %v997_v21 = vmul.f32 0.5, %v2690_v26 }
 0x20a   : > { %2939 = vtanh.f32 %v992_v6  ;;  %v2558_v25 = vpop.f32.mrb[7].mxu1  ;;  %v4034_v6 = vrot.slane %v628_v27, %v4447_v20 }
 0x20b   : > { %2941 = vtanh.f32 %v997_v21  ;;  %v1001_v25 = vadd.f32 %v4028_v31, %v985_v24 }
 0x20c   : > { %v776_v21 = vadd.f32 %v775_v33, %v4034_v6  ;;  %v645_v33 = vld [vmem:[%s4514_s17] sm:$0x7] }
 0x20f   : > { %v4030_v63 = vpop.f32.mrb[8].mxu1 }
 0x210   : > { %v2563_v37 = vpop.f32.mrb[9].mxu1 }
 0x211   : > { %v1109_v39 = vpop.f32.mrb[10].mxu1 }
 0x212   : > { %v2564_v26 = vpop.f32.mrb[11].mxu1 }
 0x213   : > { %v4051_v26 = vrot.slane %v645_v33, %v636_v29 }
 0x214   : > { %v2940_v5 = vpop.eup %2939 }
 0x215   : > { %v994_v23 = vadd.f32 1.0, %v2940_v5  ;;  %v2942_v36 = vpop.eup %2941  ;;  %v1346_v5 = vstv %s1345_s7  ;;  %s4093_s7 = smul.u32 3, %s1341_s30 }
 0x216   : > { %v999_v37 = vadd.f32 1.0, %v2942_v36  ;;  %vm1347_vm2 = vcmp.eq.s32.totalorder %v1346_v5, 1  ;;  %v4516_v5 = vmov 0.0  }
 0x217   : > { %v995_v28 = vmul.f32 0.5, %v994_v23  ;;  %s1343_s0 = sadd.s32 2, %s4093_s7  ;;  %p2126_p7 = scmp.lt.s32.totalorder %s4093_s7, 8 }
 0x218   : > { %v1000_v39 = vmul.f32 0.5, %v999_v37  ;;  %p1349_p10 = scmp.lt.s32.totalorder %s1343_s0, 8 }
 0x219   : > { %v1002_v32 = vmul.f32 %v1001_v25, %v995_v28  ;;  %v4046_v25 = vrot.slane %v645_v33, %v632_v3 }
 0x21a   : > { %v1005_v27 = vsub.f32 1.0, %v1000_v39  ;;  %v1007_v24 = vmul.f32 %v1000_v39, %v3845_v30  ;;  %s1350_s4 = scalar_select %p1349_p10, 1, 0 }
 0x21b   : > { %v1003_v18 = vadd.f32 %v1002_v32, %v776_v21 }
 0x21d   : > { %2943 = vtanh.f32 %v1003_v18 }
 0x227   : > { %v2944_v20 = vpop.eup %2943 }
 0x228   : > { %v1006_v23 = vmul.f32 %v2944_v20, %v1005_v27  ;;  %v4515_v27 = vmov 0  }
 0x22a   : > { %v1008_v18 = vadd.f32 %v1007_v24, %v1006_v23 }
 0x22c   : > { %v4049_v32 = vsel %vm1347_vm2, %v1008_v18, %v3845_v30  ;;  %v2445_v30 = vld [vmem:[%s3734_s14 + $0x8] sm:$0xff] }
 0x22d   : > { %v1275_v36 = vpop.f32.mrb[4].mxu0  ;;  %1354 = vst [vmem:[%s3752_s29] sm:$0xff] %v4049_v32  ;;  %v1444_v20 = vpack.c.bf16 %v4049_v32, %v4049_v32  ;;  %v1546_v23 = vpack.c.bf16 %v2445_v30, %v2445_v30 }
 0x22e   : > { %v2691_v28 = vadd.f32 %v1275_v36, %v4046_v25  ;;  %v1277_v21 = vpop.f32.mrb[5].mxu0 }
 0x22f   : > { %v1279_v37 = vpop.f32.mrb[6].mxu0  ;;  %1478 = vmatmul.mubr.bf16.vlgmr.msra.gmra.mrb[8].mxu0 %v1444_v20  ;;  %2608 = vmatmul.mubr.bf16.vlgmr.msra.gmra.mrb[20].mxu1 %v1444_v20  ;;  %v2692_v29 = vadd.f32 %v1277_v21, %v4051_v26  ;;  %v1316_v24 = vpop.f32.mrb[12].mxu1  ;;  %v4076_v21 = vld [vmem:[%s4517_s19] ss:$0 sm:$0xff]  ;;  %s2122_s19 = scalar_select %p2121_p9, 1, 0 }
 0x230   : > { %v1323_v3 = vmul.f32 0.5, %v2691_v28  ;;  %v1280_v39 = vpop.f32.mrb[7].mxu0  ;;  %1551 = vmatpush1.bf16.msra.mxu0 %v3858_v34  ;;  %2612 = vmatpush3.bf16.msra.mxu1 %v3872_v38  ;;  %v2583_v18 = vpop.f32.mrb[13].mxu1 }
 0x231   : > { %1582 = vmatprep.mubr.bf16.mxu0 %v4515_v27  ;;  %2613 = vmatprep.mubr.msk.bf16.mxu1 %vm3330_vm1, %v4516_v5  ;;  %v1319_v36 = vpop.f32.mrb[14].mxu1  ;;  %v1328_v20 = vmul.f32 0.5, %v2692_v29  ;;  %v1332_v29 = vadd.f32 %v4076_v21, %v1316_v24 }
 0x232   : > { %2945 = vtanh.f32 %v1323_v3  ;;  %1632 = vmatprep.subr.bf16.mxu0 %v3860_v35  ;;  %2617 = vmatprep.subr.bf16.mxu1 %v4516_v5  ;;  %v2584_v28 = vpop.f32.mrb[15].mxu1  ;;  %v4518_v3 = vsub.s32 2, %v4011_v8 }
 0x233   : > { %2947 = vtanh.f32 %v1328_v20  ;;  %v1351_v28 = vstv %s1350_s4 }
 0x234   : > { %v4086_v39 = vrot.slane %v645_v33, %v4518_v3  ;;  %vm1352_vm3 = vcmp.eq.s32.totalorder %v1351_v28, 1 }
 0x236   : > { %v1107_v8 = vadd.f32 %v4030_v63, %v4086_v39 }
 0x237   : > { %2446 = vmatmul.mubr.msk.bf16.vlgmr.msra.gmra.mrb[12].mxu0 %vm696_vm0, %v1546_v23  ;;  %2614 = vmatmul.mubr.msk.bf16.vlgmr.msra.gmra.mrb[24].mxu1 %vm696_vm0, %v1546_v23 }
 0x238   : > { %1633 = vmatpush1.bf16.msra.mxu0 %v3875_v40  ;;  %2618 = vmatpush3.bf16.msra.mxu1 %v3891_v44 }
 0x239   : > { %1634 = vmatprep.subr.bf16.mxu0 %v3877_v41  ;;  %2619 = vmatprep.subr.bf16.mxu1 %v4516_v5 }
 0x23a   : > { %1664 = vmatprep.mubr.bf16.mxu0 %v4515_v27  ;;  %2633 = vmatprep.mubr.msk.bf16.mxu1 %vm3330_vm1, %v4516_v5 }
 0x23c   : > { %v2946_v37 = vpop.eup %2945  ;;  %1635 = vmatpush1.bf16.msra.mxu0 %v3885_v42  ;;  %2620 = vmatpush3.bf16.msra.mxu1 %v3901_v47 }
 0x23d   : > { %v1325_v30 = vadd.f32 1.0, %v2946_v37  ;;  %1636 = vmatprep.subr.bf16.mxu0 %v3889_v43  ;;  %2621 = vmatprep.subr.bf16.mxu1 %v4516_v5  ;;  %v2948_v24 = vpop.eup %2947 }
 0x23e   : > { %v1330_v36 = vadd.f32 1.0, %v2948_v24 }
 0x23f   : > { %v1326_v23 = vmul.f32 0.5, %v1325_v30 }
 0x240   : > { %1637 = vmatpush1.bf16.msra.mxu0 %v3894_v45  ;;  %2622 = vmatpush3.bf16.msra.mxu1 %v3913_v50  ;;  %v1331_v63 = vmul.f32 0.5, %v1330_v36 }
 0x241   : > { %v1333_v33 = vmul.f32 %v1332_v29, %v1326_v23  ;;  %1638 = vmatprep.subr.bf16.mxu0 %v3898_v46  ;;  %2623 = vmatprep.subr.bf16.mxu1 %v4516_v5 }
 0x242   : > { %v1336_v20 = vsub.f32 1.0, %v1331_v63  ;;  %v1338_v3 = vmul.f32 %v1331_v63, %v3949_v61 }
 0x243   : > { %v1334_v18 = vadd.f32 %v1333_v33, %v1107_v8 }
 0x244   : > { %1639 = vmatpush1.bf16.msra.mxu0 %v3907_v48  ;;  %2624 = vmatpush3.bf16.msra.mxu1 %v3923_v53 }
 0x245   : > { %2949 = vtanh.f32 %v1334_v18  ;;  %1640 = vmatprep.subr.bf16.mxu0 %v3910_v49  ;;  %2625 = vmatprep.subr.bf16.mxu1 %v4516_v5  ;;  %v2450_v18 = vld [vmem:[%s3724_s11 + $0x10] sm:$0xff]  ;;  %s1731_s11 = sadd.s32 1, %s4039_s20 }
 0x246   : > { %v1749_v36 = vpack.c.bf16 %v2450_v18, %v2450_v18  ;;  %p1733_p0 = scmp.lt.s32.totalorder %s1731_s11, 8 }
 0x247   : > { %s2127_s20 = scalar_select %p2126_p7, 1, 0 }
 0x248   : > { %1641 = vmatpush1.bf16.msra.mxu0 %v3917_v51  ;;  %2626 = vmatpush3.bf16.msra.mxu1 %v3933_v56  ;;  %s1734_s17 = scalar_select %p1733_p0, 1, 0 }
 0x249   : > { %1642 = vmatprep.subr.bf16.mxu0 %v3920_v52  ;;  %2627 = vmatprep.subr.bf16.mxu1 %v4516_v5 }
 0x24c   : > { %1643 = vmatpush1.bf16.msra.mxu0 %v3927_v54  ;;  %2628 = vmatpush3.bf16.msra.mxu1 %v3943_v59 }
 0x24d   : > { %1644 = vmatprep.subr.bf16.mxu0 %v3930_v55  ;;  %2629 = vmatprep.subr.bf16.mxu1 %v4516_v5 }
 0x24f   : > { %v2950_v37 = vpop.eup %2949 }
 0x250   : > { %v1337_v30 = vmul.f32 %v2950_v37, %v1336_v20  ;;  %1645 = vmatpush1.bf16.msra.mxu0 %v3937_v57  ;;  %2630 = vmatpush3.bf16.msra.mxu1 %v3953_v62  ;;  %v4532_v20 = vld [vmem:[#allocation41_spill] sm:$0xff] }
 0x251   : > { %1646 = vmatprep.subr.bf16.mxu0 %v3940_v58  ;;  %2631 = vmatprep.subr.bf16.mxu1 %v4516_v5 }
 0x252   : > { %v1339_v29 = vadd.f32 %v1338_v3, %v1337_v30 }
 0x254   : > { %1647 = vmatpush1.bf16.msra.mxu0 %v3947_v60  ;;  %2632 = vmatpush3.bf16.msra.mxu1 %v3960_v0  ;;  %v4122_v23 = vsel %vm1352_vm3, %v1339_v29, %v3949_v61  ;;  %v4137_v61 = vpop.f32.mrb[16].mxu1 }
 0x255   : > { %2441 = vst [vmem:[%s3754_s21 + $0x10] sm:$0xff] %v4122_v23  ;;  %v1631_v8 = vpack.c.bf16 %v4122_v23, %v4122_v23  ;;  %1753 = vmatprep.subr.bf16.mxu0 %v3758_v1  ;;  %2637 = vmatprep.subr.bf16.mxu1 %v4516_v5  ;;  %v2589_v1 = vpop.f32.mrb[17].mxu1 }
 0x256   : > { %v1441_v33 = vpop.f32.mrb[18].mxu1 }
 0x257   : > { %1665 = vmatmul.mubr.bf16.vlgmr.msra.gmra.mrb[12].mxu0 %v1631_v8  ;;  %2634 = vmatmul.mubr.bf16.vlgmr.msra.gmra.mrb[28].mxu1 %v1631_v8  ;;  %v2590_v24 = vpop.f32.mrb[19].mxu1 }
 0x258   : > { %1754 = vmatpush1.bf16.msra.mxu0 %v3760_v2  ;;  %2638 = vmatpush3.bf16.msra.mxu1 %v3777_v10  ;;  %v4519_v2 = vld [vmem:[#allocation28_spill] sm:$0xff]  ;;  %v4523_v10 = vld [vmem:[#allocation31_spill] sm:$0xff]  ;;  %v4533_v24 = vld [vmem:[#allocation42_spill] sm:$0xff] }
 0x259   : > { %1785 = vmatprep.mubr.bf16.mxu0 %v4515_v27  ;;  %2639 = vmatprep.mubr.msk.bf16.mxu1 %vm3330_vm1, %v4516_v5 }
 0x25a   : > { %1835 = vmatprep.subr.bf16.mxu0 %v3764_v4  ;;  %2643 = vmatprep.subr.bf16.mxu1 %v4516_v5  ;;  %v4520_v4 = vld [vmem:[#allocation29_spill] sm:$0xff] }
 0x25f   : > { %2451 = vmatmul.mubr.msk.bf16.vlgmr.msra.gmra.mrb[16].mxu0 %vm696_vm0, %v1749_v36  ;;  %2640 = vmatmul.mubr.msk.bf16.vlgmr.msra.gmra.mrb[32].mxu1 %vm696_vm0, %v1749_v36 }
 0x260   : > { %1836 = vmatpush1.bf16.msra.mxu0 %v3769_v7  ;;  %2644 = vmatpush3.bf16.msra.mxu1 %v3788_v13  ;;  %v4521_v7 = vld [vmem:[#allocation33_spill] sm:$0xff]  ;;  %v4526_v13 = vld [vmem:[#allocation34_spill] sm:$0xff] }
 0x261   : > { %1837 = vmatprep.subr.bf16.mxu0 %v3774_v9  ;;  %2645 = vmatprep.subr.bf16.mxu1 %v4516_v5  ;;  %v4522_v9 = vld [vmem:[#allocation30_spill] sm:$0xff] }
 0x262   : > { %1867 = vmatprep.mubr.bf16.mxu0 %v4515_v27  ;;  %2659 = vmatprep.mubr.msk.bf16.mxu1 %vm3330_vm1, %v4516_v5 }
 0x264   : > { %1838 = vmatpush1.bf16.msra.mxu0 %v3780_v11  ;;  %2646 = vmatpush3.bf16.msra.mxu1 %v3798_v16  ;;  %v4524_v11 = vld [vmem:[#allocation36_spill] sm:$0xff]  ;;  %v4529_v16 = vld [vmem:[#allocation37_spill] sm:$0xff] }
 0x265   : > { %1839 = vmatprep.subr.bf16.mxu0 %v3784_v12  ;;  %2647 = vmatprep.subr.bf16.mxu1 %v4516_v5  ;;  %v4525_v12 = vld [vmem:[#allocation32_spill] sm:$0xff] }
 0x268   : > { %1840 = vmatpush1.bf16.msra.mxu0 %v3791_v14  ;;  %2648 = vmatpush3.bf16.msra.mxu1 %v3810_v19  ;;  %v4527_v14 = vld [vmem:[#allocation39_spill] sm:$0xff]  ;;  %v4531_v19 = vld [vmem:[#allocation38_spill] sm:$0xff] }
 0x269   : > { %1841 = vmatprep.subr.bf16.mxu0 %v3793_v15  ;;  %2649 = vmatprep.subr.bf16.mxu1 %v4516_v5  ;;  %v4528_v15 = vld [vmem:[#allocation35_spill] sm:$0xff] }
 0x26c   : > { %1842 = vmatpush1.bf16.msra.mxu0 %v3803_v17  ;;  %2650 = vmatpush3.bf16.msra.mxu1 %v3820_v22  ;;  %v4530_v17 = vld [vmem:[#allocation40_spill] sm:$0xff] }
 0x26d   : > { %1843 = vmatprep.subr.bf16.mxu0 %v4519_v2  ;;  %2651 = vmatprep.subr.bf16.mxu1 %v4516_v5 }
 0x270   : > { %1844 = vmatpush1.bf16.msra.mxu0 %v4520_v4  ;;  %2652 = vmatpush3.bf16.msra.mxu1 %v4521_v7 }
 0x271   : > { %1845 = vmatprep.subr.bf16.mxu0 %v4522_v9  ;;  %2653 = vmatprep.subr.bf16.mxu1 %v4516_v5 }
 0x274   : > { %1846 = vmatpush1.bf16.msra.mxu0 %v4523_v10  ;;  %2654 = vmatpush3.bf16.msra.mxu1 %v4524_v11 }
 0x275   : > { %1847 = vmatprep.subr.bf16.mxu0 %v4525_v12  ;;  %2655 = vmatprep.subr.bf16.mxu1 %v4516_v5 }
 0x278   : > { %1848 = vmatpush1.bf16.msra.mxu0 %v4526_v13  ;;  %2656 = vmatpush3.bf16.msra.mxu1 %v4527_v14  ;;  %v1439_v14 = vadd.f32 %v4137_v61, %v4034_v6 }
 0x279   : > { %1849 = vmatprep.subr.bf16.mxu0 %v4528_v15  ;;  %2657 = vmatprep.subr.bf16.mxu1 %v4516_v5 }
 0x27c   : > { %1850 = vmatpush1.bf16.msra.mxu0 %v4529_v16  ;;  %2658 = vmatpush3.bf16.msra.mxu1 %v4530_v17 }
 0x27d   : > { %1939 = vmatprep.subr.bf16.mxu0 %v4531_v19  ;;  %2663 = vmatprep.subr.bf16.mxu1 %v4516_v5 }
 0x302   : > { %v1479_v22 = vpop.f32.mrb[8].mxu0  ;;  %v1520_v63 = vpop.f32.mrb[20].mxu1 }
 0x303   : > { %v2693_v28 = vadd.f32 %v1479_v22, %v4532_v20  ;;  %v1481_v37 = vpop.f32.mrb[9].mxu0  ;;  %v2609_v3 = vpop.f32.mrb[21].mxu1  ;;  %v1536_v13 = vadd.f32 %v4028_v31, %v1520_v63 }
 0x304   : > { %v1483_v30 = vpop.f32.mrb[10].mxu0  ;;  %v1523_v29 = vpop.f32.mrb[22].mxu1  ;;  %v2694_v18 = vadd.f32 %v1481_v37, %v4533_v24  ;;  %v1735_v37 = vstv %s1734_s17 }
 0x305   : > { %v1527_v8 = vmul.f32 0.5, %v2693_v28  ;;  %v1484_v1 = vpop.f32.mrb[11].mxu0  ;;  %v2610_v33 = vpop.f32.mrb[23].mxu1  ;;  %vm1736_vm4 = vcmp.eq.s32.totalorder %v1735_v37, 1 }
 0x306   : > { %v1532_v36 = vmul.f32 0.5, %v2694_v18 }
 0x307   : > { %2951 = vtanh.f32 %v1527_v8 }
 0x308   : > { %2953 = vtanh.f32 %v1532_v36 }
 0x30a   : > { %v4179_v2 = vpop.f32.mrb[24].mxu1 }
 0x30b   : > { %v2615_v4 = vpop.f32.mrb[25].mxu1 }
 0x30c   : > { %v1628_v7 = vpop.f32.mrb[26].mxu1 }
 0x30d   : > { %v2616_v9 = vpop.f32.mrb[27].mxu1 }
 0x311   : > { %v2952_v10 = vpop.eup %2951 }
 0x312   : > { %v1529_v11 = vadd.f32 1.0, %v2952_v10  ;;  %v2954_v16 = vpop.eup %2953 }
 0x313   : > { %v1534_v19 = vadd.f32 1.0, %v2954_v16 }
 0x314   : > { %v1530_v12 = vmul.f32 0.5, %v1529_v11 }
 0x315   : > { %v1535_v22 = vmul.f32 0.5, %v1534_v19 }
 0x316   : > { %v1537_v15 = vmul.f32 %v1536_v13, %v1530_v12  ;;  %v1934_v12 = vld [vmem:[%s3734_s14] sm:$0xff]  ;;  %s1732_s14 = sadd.s32 1, %s4093_s7 }
 0x317   : > { %v1540_v28 = vsub.f32 1.0, %v1535_v22  ;;  %v1542_v29 = vmul.f32 %v1535_v22, %v4049_v32  ;;  %p1738_p5 = scmp.lt.s32.totalorder %s1732_s14, 8 }
 0x318   : > { %v1538_v17 = vadd.f32 %v1537_v15, %v1439_v14  ;;  %v1935_v14 = vpack.c.bf16 %v1934_v12, %v1934_v12 }
 0x319   : > { %s1739_s16 = scalar_select %p1738_p5, 1, 0 }
 0x31a   : > { %2955 = vtanh.f32 %v1538_v17 }
 0x324   : > { %v2956_v3 = vpop.eup %2955 }
 0x325   : > { %v1541_v30 = vmul.f32 %v2956_v3, %v1540_v28 }
 0x327   : > { %v1543_v63 = vadd.f32 %v1542_v29, %v1541_v30 }
 0x329   : > { %v4187_v61 = vsel %vm1736_vm4, %v1543_v63, %v4049_v32 }
 0x32a   : > { %v1666_v8 = vpop.f32.mrb[12].mxu0  ;;  %v1707_v1 = vpop.f32.mrb[28].mxu1  ;;  %2448 = vst [vmem:[%s3752_s29 + $0x8] sm:$0xff] %v4187_v61  ;;  %v1834_v33 = vpack.c.bf16 %v4187_v61, %v4187_v61 }
 0x32b   : > { %v2695_v18 = vadd.f32 %v1666_v8, %v4046_v25  ;;  %v1668_v36 = vpop.f32.mrb[13].mxu0  ;;  %v2635_v4 = vpop.f32.mrb[29].mxu1 }
 0x32c   : > { %v1670_v7 = vpop.f32.mrb[14].mxu0  ;;  %v1710_v9 = vpop.f32.mrb[30].mxu1  ;;  %1868 = vmatmul.mubr.bf16.vlgmr.msra.gmra.mrb[16].mxu0 %v1834_v33  ;;  %2660 = vmatmul.mubr.bf16.vlgmr.msra.gmra.mrb[36].mxu1 %v1834_v33  ;;  %v2696_v13 = vadd.f32 %v1668_v36, %v4051_v26 }
 0x32d   : > { %v1714_v10 = vmul.f32 0.5, %v2695_v18  ;;  %v1671_v11 = vpop.f32.mrb[15].mxu0  ;;  %v2636_v32 = vpop.f32.mrb[31].mxu1  ;;  %1940 = vmatpush1.bf16.msra.mxu0 %v3858_v34  ;;  %2664 = vmatpush3.bf16.msra.mxu1 %v3872_v38  ;;  %v2123_v9 = vstv %s2122_s19 }
 0x32e   : > { %1971 = vmatprep.mubr.bf16.mxu0 %v4515_v27  ;;  %2665 = vmatprep.mubr.msk.bf16.mxu1 %vm3330_vm1, %v4516_v5  ;;  %v1719_v15 = vmul.f32 0.5, %v2696_v13  ;;  %vm2124_vm6 = vcmp.eq.s32.totalorder %v2123_v9, 1 }
 0x32f   : > { %2957 = vtanh.f32 %v1714_v10  ;;  %2021 = vmatprep.subr.bf16.mxu0 %v3860_v35  ;;  %2669 = vmatprep.subr.bf16.mxu1 %v4516_v5 }
 0x330   : > { %2959 = vtanh.f32 %v1719_v15 }
 0x334   : > { %2453 = vmatmul.mubr.msk.bf16.vlgmr.msra.gmra.mrb[20].mxu0 %vm696_vm0, %v1935_v14  ;;  %2666 = vmatmul.mubr.msk.bf16.vlgmr.msra.gmra.mrb[40].mxu1 %vm696_vm0, %v1935_v14 }
 0x335   : > { %2022 = vmatpush1.bf16.msra.mxu0 %v3875_v40  ;;  %2670 = vmatpush3.bf16.msra.mxu1 %v3891_v44  ;;  %v1723_v40 = vadd.f32 %v4076_v21, %v1707_v1 }
 0x336   : > { %2023 = vmatprep.subr.bf16.mxu0 %v3877_v41  ;;  %2671 = vmatprep.subr.bf16.mxu1 %v4516_v5  ;;  %v1626_v41 = vadd.f32 %v4179_v2, %v4086_v39 }
 0x337   : > { %2053 = vmatprep.mubr.bf16.mxu0 %v4515_v27  ;;  %2685 = vmatprep.mubr.msk.bf16.mxu1 %vm3330_vm1, %v4516_v5 }
 0x339   : > { %v2958_v34 = vpop.eup %2957  ;;  %2024 = vmatpush1.bf16.msra.mxu0 %v3885_v42  ;;  %2672 = vmatpush3.bf16.msra.mxu1 %v3901_v47 }
 0x33a   : > { %v1716_v35 = vadd.f32 1.0, %v2958_v34  ;;  %2025 = vmatprep.subr.bf16.mxu0 %v3889_v43  ;;  %2673 = vmatprep.subr.bf16.mxu1 %v4516_v5  ;;  %v2960_v42 = vpop.eup %2959 }
 0x33b   : > { %v1721_v43 = vadd.f32 1.0, %v2960_v42 }
 0x33c   : > { %v1717_v38 = vmul.f32 0.5, %v1716_v35 }
 0x33d   : > { %2026 = vmatpush1.bf16.msra.mxu0 %v3894_v45  ;;  %2674 = vmatpush3.bf16.msra.mxu1 %v3913_v50  ;;  %v1722_v45 = vmul.f32 0.5, %v1721_v43 }
 0x33e   : > { %v1724_v44 = vmul.f32 %v1723_v40, %v1717_v38  ;;  %2027 = vmatprep.subr.bf16.mxu0 %v3898_v46  ;;  %2675 = vmatprep.subr.bf16.mxu1 %v4516_v5 }
 0x33f   : > { %v1727_v46 = vsub.f32 1.0, %v1722_v45 }
 0x340   : > { %v1725_v47 = vadd.f32 %v1724_v44, %v1626_v41 }
 0x341   : > { %2028 = vmatpush1.bf16.msra.mxu0 %v3907_v48  ;;  %2676 = vmatpush3.bf16.msra.mxu1 %v3923_v53  ;;  %v1740_v48 = vstv %s1739_s16 }
 0x342   : > { %2961 = vtanh.f32 %v1725_v47  ;;  %2029 = vmatprep.subr.bf16.mxu0 %v3910_v49  ;;  %2677 = vmatprep.subr.bf16.mxu1 %v4516_v5  ;;  %vm1741_vm5 = vcmp.eq.s32.totalorder %v1740_v48, 1 }
 0x345   : > { %2030 = vmatpush1.bf16.msra.mxu0 %v3917_v51  ;;  %2678 = vmatpush3.bf16.msra.mxu1 %v3933_v56  ;;  %v1729_v51 = vmul.f32 %v1722_v45, %v4122_v23 }
 0x346   : > { %2031 = vmatprep.subr.bf16.mxu0 %v3920_v52  ;;  %2679 = vmatprep.subr.bf16.mxu1 %v4516_v5 }
 0x349   : > { %2032 = vmatpush1.bf16.msra.mxu0 %v3927_v54  ;;  %2680 = vmatpush3.bf16.msra.mxu1 %v3943_v59 }
 0x34a   : > { %2033 = vmatprep.subr.bf16.mxu0 %v3930_v55  ;;  %2681 = vmatprep.subr.bf16.mxu1 %v4516_v5  ;;  %v1828_v55 = vpop.f32.mrb[32].mxu1 }
 0x34b   : > { %v2641_v56 = vpop.f32.mrb[33].mxu1  ;;  %v1829_v1 = vadd.f32 %v1828_v55, %v4034_v6 }
 0x34c   : > { %v2962_v49 = vpop.eup %2961 }
 0x34d   : > { %v1728_v50 = vmul.f32 %v2962_v49, %v1727_v46  ;;  %2034 = vmatpush1.bf16.msra.mxu0 %v3937_v57  ;;  %2682 = vmatpush3.bf16.msra.mxu1 %v3953_v62  ;;  %v1831_v57 = vpop.f32.mrb[34].mxu1 }
 0x34e   : > { %2035 = vmatprep.subr.bf16.mxu0 %v3940_v58  ;;  %2683 = vmatprep.subr.bf16.mxu1 %v4516_v5  ;;  %v2642_v58 = vpop.f32.mrb[35].mxu1 }
 0x34f   : > { %v1730_v52 = vadd.f32 %v1729_v51, %v1728_v50 }
 0x351   : > { %2036 = vmatpush1.bf16.msra.mxu0 %v3947_v60  ;;  %2684 = vmatpush3.bf16.msra.mxu1 %v3960_v0  ;;  %v4244_v53 = vsel %vm1741_vm5, %v1730_v52, %v4122_v23 }
 0x352   : > { %2449 = vst [vmem:[%s3754_s21 + $0x8] sm:$0xff] %v4244_v53  ;;  %v2020_v54 = vpack.c.bf16 %v4244_v53, %v4244_v53 }
 0x354   : > { %2054 = vmatmul.mubr.bf16.vlgmr.msra.gmra.mrb[20].mxu0 %v2020_v54  ;;  %2686 = vmatmul.mubr.bf16.vlgmr.msra.gmra.mrb[44].mxu1 %v2020_v54  ;;  %v2128_v54 = vstv %s2127_s20 }
 0x355   : > { %vm2129_vm7 = vcmp.eq.s32.totalorder %v2128_v54, 1 }
 0x3ff   : > { %v1869_v59 = vpop.f32.mrb[16].mxu0  ;;  %v1910_v62 = vpop.f32.mrb[36].mxu1 }
 0x400   : > { %v2697_v60 = vadd.f32 %v1869_v59, %v4532_v20  ;;  %v1871_v27 = vpop.f32.mrb[17].mxu0  ;;  %v2661_v0 = vpop.f32.mrb[37].mxu1  ;;  %v1926_v8 = vadd.f32 %v4028_v31, %v1910_v62 }
 0x401   : > { %v1873_v5 = vpop.f32.mrb[18].mxu0  ;;  %v1913_v23 = vpop.f32.mrb[38].mxu1  ;;  %v2698_v19 = vadd.f32 %v1871_v27, %v4533_v24 }
 0x402   : > { %v1917_v2 = vmul.f32 0.5, %v2697_v60  ;;  %v1874_v16 = vpop.f32.mrb[19].mxu0  ;;  %v2662_v17 = vpop.f32.mrb[39].mxu1 }
 0x403   : > { %v1922_v22 = vmul.f32 0.5, %v2698_v19 }
 0x404   : > { %2963 = vtanh.f32 %v1917_v2 }
 0x405   : > { %2965 = vtanh.f32 %v1922_v22 }
 0x407   : > { %v2014_v28 = vpop.f32.mrb[40].mxu1 }
 0x408   : > { %v2667_v37 = vpop.f32.mrb[41].mxu1 }
 0x409   : > { %v2017_v3 = vpop.f32.mrb[42].mxu1 }
 0x40a   : > { %v2668_v30 = vpop.f32.mrb[43].mxu1 }
 0x40e   : > { %v2964_v29 = vpop.eup %2963 }
 0x40f   : > { %v1919_v63 = vadd.f32 1.0, %v2964_v29  ;;  %v2966_v18 = vpop.eup %2965 }
 0x410   : > { %v1924_v24 = vadd.f32 1.0, %v2966_v18 }
 0x411   : > { %v1920_v20 = vmul.f32 0.5, %v1919_v63 }
 0x412   : > { %v1925_v4 = vmul.f32 0.5, %v1924_v24 }
 0x413   : > { %v1927_v33 = vmul.f32 %v1926_v8, %v1920_v20 }
 0x414   : > { %v1930_v7 = vsub.f32 1.0, %v1925_v4  ;;  %v1932_v32 = vmul.f32 %v1925_v4, %v4187_v61 }
 0x415   : > { %v1928_v36 = vadd.f32 %v1927_v33, %v1829_v1 }
 0x417   : > { %2967 = vtanh.f32 %v1928_v36 }
 0x421   : > { %v2968_v10 = vpop.eup %2967 }
 0x422   : > { %v1931_v11 = vmul.f32 %v2968_v10, %v1930_v7 }
 0x424   : > { %v1933_v31 = vadd.f32 %v1932_v32, %v1931_v11 }
 0x426   : > { %v2125_v6 = vsel %vm2124_vm6, %v1933_v31, %v4187_v61 }
 0x427   : > { %2455 = vst [vmem:[%s3752_s29 + $0x10] sm:$0xff] %v2125_v6  ;;  %2134 = vst [vmem:[#allocation2] sm:$0xff] %v2125_v6  ;;  %v2055_v12 = vpop.f32.mrb[20].mxu0  ;;  %v2096_v13 = vpop.f32.mrb[44].mxu1 }
 0x428   : > { %v2699_v14 = vadd.f32 %v2055_v12, %v4046_v25  ;;  %v2057_v15 = vpop.f32.mrb[21].mxu0  ;;  %v2687_v34 = vpop.f32.mrb[45].mxu1  ;;  %v2112_v46 = vadd.f32 %v4076_v21, %v2096_v13  ;;  %v2015_v25 = vadd.f32 %v2014_v28, %v4086_v39  ;;  %2140 = vst [vmem:[#allocation18] sm:$0xff] (!%p2456_p6), %v2125_v6 }
 0x429   : > { %v2059_v35 = vpop.f32.mrb[22].mxu0  ;;  %v2099_v38 = vpop.f32.mrb[46].mxu1  ;;  %v2700_v42 = vadd.f32 %v2057_v15, %v4051_v26 }
 0x42a   : > { %v2103_v40 = vmul.f32 0.5, %v2699_v14  ;;  %v2060_v41 = vpop.f32.mrb[23].mxu0  ;;  %v2688_v44 = vpop.f32.mrb[47].mxu1 }
 0x42b   : > { %v2108_v47 = vmul.f32 0.5, %v2700_v42 }
 0x42c   : > { %2969 = vtanh.f32 %v2103_v40 }
 0x42d   : > { %2971 = vtanh.f32 %v2108_v47 }
 0x436   : > { %v2970_v61 = vpop.eup %2969 }
 0x437   : > { %v2105_v43 = vadd.f32 1.0, %v2970_v61  ;;  %v2972_v49 = vpop.eup %2971 }
 0x438   : > { %v2110_v51 = vadd.f32 1.0, %v2972_v49 }
 0x439   : > { %v2106_v45 = vmul.f32 0.5, %v2105_v43 }
 0x43a   : > { %v2111_v52 = vmul.f32 0.5, %v2110_v51 }
 0x43b   : > { %v2113_v48 = vmul.f32 %v2112_v46, %v2106_v45 }
 0x43c   : > { %v2116_v26 = vsub.f32 1.0, %v2111_v52  ;;  %v2118_v57 = vmul.f32 %v2111_v52, %v4244_v53 }
 0x43d   : > { %v2114_v50 = vadd.f32 %v2113_v48, %v2015_v25 }
 0x43f   : > { %2973 = vtanh.f32 %v2114_v50 }
 0x449   : > { %v2974_v55 = vpop.eup %2973  ;;  %2139 = sbr.rel (%p2456_p6) target bundleno = 1105 (0x451), region = 92 }
 0x44a   : > { %v2117_v56 = vmul.f32 %v2974_v55, %v2116_v26 }
 0x44c   : > { %v2119_v58 = vadd.f32 %v2118_v57, %v2117_v56 }
 0x44e   : > { %v2130_v21 = vsel %vm2129_vm7, %v2119_v58, %v4244_v53 }
 0x44f   : > { %2133 = vst [vmem:[%s3754_s21] sm:$0xff] %v2130_v21  ;;  %2135 = vst [vmem:[#allocation3] sm:$0xff] %v2130_v21 }
 0x450   : > { %2141 = vst [vmem:[#allocation18 + $0x8] sm:$0xff] %v2130_v21 }
 0x451 PF: > { %s2466_s7 = smul.u32 384, %s1341_s30  ;;  %s2178_s0 = sshll.u32 %s3754_s21, 4  ;;  %s4275_s0 = int_to_ptr.vmem [resolvable:$true] %s2178_s0 }
 0x452   : > { %s4534_s17 = sld [smem:[#allocation54_spill]]  ;;  %s4279_s16 = scalar_lea.sflag [#allocation17], %s472_s9 }
 0x453   : > { %s3147_s13 = scalar_lea.vmem %s4275_s0, 384  ;;  %p4535_p12 = scmp.ne.s32.totalorder %s4481_s18, 0 }
 0x454   : > { %p3148_p11 = scmp.ne.s32.totalorder %s4275_s0, %s3147_s13  ;;  %s3331_s30 = smov [#allocation16]  }
 0x455   : > { %s3151_s21 = sshll.u32 %s3331_s30, 4  ;;  %s3152_s21 = int_to_ptr.vmem [resolvable:$false] %s3151_s21 }
 0x456   : > { %p3149_p4 = pnand %p3148_p11, %p4535_p12  ;;  %s3153_s19 = scalar_lea.vmem %s3152_s21, 768 }
 0x457   : > { %p3154_p8 = scmp.lt.s32.totalorder %s4275_s0, %s3152_s21  ;;  %p3155_p1 = scmp.lt.s32.totalorder %s3153_s19, %s3147_s13 }
 0x458   : > { %s4273_s14 = scalar_lea.hbm %s4534_s17, %s2466_s7  ;;  %p3150_p3 = pneg %p3149_p4 }
 0x459   : > { %p3156_p13 = por %p3155_p1, %p3154_p8 }
 0x45b   : > { %p3157_p2 = pnand %p3156_p13, %p3150_p3 }
 0x45d   : > { %3160 = shalt.err (!%p3157_p2)
}
 0x45e   : > { %s3161_s9 = scalar_lea.hbm %s4273_s14, 384  ;;  %s3165_s4 = scalar_lea.hbm %s4534_s17, 1152 }
 0x45f   : > { %p3162_p10 = scmp.ne.s32.totalorder %s4273_s14, %s3161_s9  ;;  %p3166_p9 = scmp.lt.u32.totalorder %s4273_s14, %s4534_s17 }
 0x460   : > { %p3167_p7 = scmp.lt.u32.totalorder %s3165_s4, %s3161_s9  ;;  %p3169_p11 = scmp.lt.u32.totalorder %s3161_s9, %s4273_s14 }
 0x461   : > { %p3163_p0 = pnand %p3162_p10, %p4535_p12 }
 0x462   : > { %p3168_p6 = por %p3167_p7, %p3166_p9 }
 0x463   : > { %p3164_p5 = pneg %p3163_p0 }
 0x464   : > { %p3170_p4 = por %p3169_p11, %p3168_p6 }
 0x466   : > { %p3171_p3 = pnand %p3170_p4, %p3164_p5 }
 0x468   : > { %3174 = shalt.err (!%p3171_p3)
}
 0x469   : > { %s3332_s13 = smov 128   ;;  %s3333_s21 = smov 8  }
 0x46a   : > { %2750 = dma.vmem_to_hbm [thread:$0]  (%p4535_p12), %s4275_s0, 384, %s4273_s14, %s4279_s16, %s3332_s13, %s3332_s13, %s3333_s21  }
 0x46b   : > { %s2465_s19 = smul.u32 384, %s3437_s28  ;;  %s2161_s9 = sshll.u32 %s3752_s29, 4  ;;  %s4308_s9 = int_to_ptr.vmem [resolvable:$true] %s2161_s9 }
 0x46c   : > { %s4536_s4 = sld [smem:[#allocation53_spill]]  ;;  %s3334_s30 = smov [#allocation18]  }
 0x46d   : > { %s4315_s1 = sshll.u32 %s3334_s30, 4  ;;  %s2143_s18 = scalar_lea.sflag [#allocation6], %s3720_s6  ;;  %s2193_s1 = int_to_ptr.vmem [resolvable:$true] %s4315_s1 }
 0x46e   : > { %s3175_s5 = scalar_lea.vmem %s4308_s9, 384  ;;  %p4537_p1 = scmp.ne.s32.totalorder %s4471_s2, 0 }
 0x46f   : > { %p3176_p8 = scmp.ne.s32.totalorder %s4308_s9, %s3175_s5  ;;  %s3335_s29 = smov [#allocation15]  }
 0x470   : > { %s3179_s0 = sshll.u32 %s3335_s29, 4  ;;  %s3180_s0 = int_to_ptr.vmem [resolvable:$false] %s3179_s0 }
 0x471   : > { %p3177_p12 = pnand %p3176_p8, %p4537_p1  ;;  %s3181_s14 = scalar_lea.vmem %s3180_s0, 768 }
 0x472   : > { %s4313_s11 = scalar_lea.hbm %s4536_s4, %s2465_s19  ;;  %p3182_p2 = scmp.lt.s32.totalorder %s4308_s9, %s3180_s0 }
 0x473   : > { %p3178_p13 = pneg %p3177_p12  ;;  %p3183_p10 = scmp.lt.s32.totalorder %s3181_s14, %s3175_s5 }
 0x475   : > { %p3184_p0 = por %p3183_p10, %p3182_p2 }
 0x477   : > { %p3185_p5 = pnand %p3184_p0, %p3178_p13 }
 0x479   : > { %3188 = shalt.err (!%p3185_p5)
}
 0x47a   : > { %s3189_s16 = scalar_lea.hbm %s4313_s11, 384  ;;  %s3193_s7 = scalar_lea.hbm %s4536_s4, 1152 }
 0x47b   : > { %p3190_p9 = scmp.ne.s32.totalorder %s4313_s11, %s3189_s16  ;;  %p3194_p11 = scmp.lt.u32.totalorder %s4313_s11, %s4536_s4 }
 0x47c   : > { %p3195_p4 = scmp.lt.u32.totalorder %s3193_s7, %s3189_s16  ;;  %p3197_p8 = scmp.lt.u32.totalorder %s3189_s16, %s4313_s11 }
 0x47d   : > { %p3191_p7 = pnand %p3190_p9, %p4537_p1 }
 0x47e   : > { %p3196_p3 = por %p3195_p4, %p3194_p11 }
 0x47f   : > { %p3192_p6 = pneg %p3191_p7 }
 0x480   : > { %p3198_p12 = por %p3197_p8, %p3196_p3 }
 0x482   : > { %p3199_p13 = pnand %p3198_p12, %p3192_p6 }
 0x484   : > { %3202 = shalt.err (!%p3199_p13)
}
 0x485   : > { %2749 = dma.vmem_to_hbm [thread:$0]  (%p4537_p1), %s4308_s9, 384, %s4313_s11, %s2143_s18, %s3332_s13, %s3332_s13, %s3333_s21  }
 0x486   : > { %s3203_s5 = scalar_lea.vmem %s2193_s1, 256  ;;  %p4538_p10 = scmp.eq.s32.totalorder %s3437_s28, 2 }
 0x487   : > { %p3204_p2 = scmp.ne.s32.totalorder %s2193_s1, %s3203_s5  ;;  %p3210_p9 = scmp.lt.s32.totalorder %s2193_s1, %s2193_s1 }
 0x488   : > { %p3211_p7 = scmp.lt.s32.totalorder %s3203_s5, %s3203_s5 }
 0x489   : > { %p3205_p0 = pnand %p3204_p2, %p4538_p10 }
 0x48a   : > { %p3212_p6 = por %p3211_p7, %p3210_p9 }
 0x48b   : > { %p3206_p5 = pneg %p3205_p0 }
 0x48d   : > { %p3213_p11 = pnand %p3212_p6, %p3206_p5 }
 0x48f   : > { %3216 = shalt.err (!%p3213_p11)
}
 0x490   : > { %s4539_s14 = sld [smem:[#allocation55_spill]]  ;;  %p4540_p4 = pmov %p4538_p10 }
 0x496   : > { %s3217_s6 = scalar_lea.hbm %s4539_s14, 256 }
 0x497   : > { %p3218_p1 = scmp.ne.s32.totalorder %s4539_s14, %s3217_s6  ;;  %p3223_p12 = scmp.lt.u32.totalorder %s3217_s6, %s4539_s14 }
 0x499   : > { %p3219_p3 = pnand %p3218_p1, %p4540_p4 }
 0x49b   : > { %p3220_p8 = pneg %p3219_p3 }
 0x49d   : > { %p3225_p13 = pnand %p3223_p12, %p3220_p8 }
 0x49f   : > { %3228 = shalt.err (!%p3225_p13)
}
 0x4a0   : > { %p4541_p2 = pmov %p4540_p4 }
 0x4a2   : > { %2752 = dma.vmem_to_hbm [thread:$0]  (%p4541_p2), %s2193_s1, 256, %s4539_s14, [#allocation17]  }
 0x4a3   : > { %p4542_p10 = pmov %p4541_p2 }
 0x4a4   : > { %p4543_p0 = pmov %p4541_p2 }
 0x4a5   : > { %3278 = dma.done.wait (%p4542_p10), [#allocation17], 256  }
 0x4a6   : > { %3280 = vsyncadd (%p4543_p0), [#allocation17], 4294967040 }
 0x4a7 PF: > { %p2795_p5 = scmp.ge.s32.totalorder %s3315_s27, 2  ;;  %s2208_s18 = sand.u32 1, %s3303_s24  }
 0x4a8   : > { %p4544_p9 = scmp.ne.s32.totalorder %s4474_s10, 0  ;;  %s2209_s20 = scalar_lea.sflag [#allocation6], %s2208_s18 }
 0x4aa   : > { %p2778_p7 = pnand %p2795_p5, %p4544_p9 }
 0x4ac   : > { %3282 = dma.done.wait (!%p2778_p7), %s2209_s20, 384  }
 0x4ad   : > { %3284 = vsyncadd (!%p2778_p7), %s2209_s20, 4294966912  ;;  %s4545_s7 = sadd.s32 4294967294, %s3315_s27   ;;  %p4546_p6 = scmp.ne.s32.totalorder %s4476_s12, 0 }
 0x4ae   : > { %s2217_s1 = sand.u32 1, %s4545_s7  }
 0x4af   : > { %p2781_p11 = pnand %p2795_p5, %p4546_p6  ;;  %s2218_s30 = scalar_lea.sflag [#allocation17], %s2217_s1 }
 0x4b1   : > { %3286 = dma.done.wait (!%p2781_p11), %s2218_s30, 384  }
 0x4b2   : > { %3288 = vsyncadd (!%p2781_p11), %s2218_s30, 4294966912  ;;  %p34_p1 = scmp.ge.s32.totalorder %s3646_s8, 5   ;;  %s4547_s21 = smov %s3295_s22 }
 0x4b3   : > { %s4548_s22 = smov %s3299_s23  ;;  %s4549_s23 = smov %s3663_s3 }
 0x4b4   : > { %s4550_s24 = smov %s3307_s25  ;;  %s4551_s25 = smov %s3311_s26 }
 0x4b5   : > { %s4552_s26 = smov %s3656_s15  ;;  %s4553_s27 = smov %s3646_s8 }
 0x4b6   :  { %36 = sbr.rel (!%p34_p1) target bundleno = 27 (0x1b), region = 175 }
 0x4bd   :  { %2223 = vsyncpa [#allocation5], 1 }
 0x4be   :  { %2225 = vsyncpa [#allocation5 + $0x1], 1 }
 0x4bf   :  { %2226 = vsyncpa [#allocation8], 1 }
 0x4c0   :  { %2228 = vsyncpa [#allocation8 + $0x1], 1 }
 0x4c1   :  { %2229 = vsyncpa [#allocation11], 1 }
 0x4c2   :  { %2230 = vsyncpa [#allocation14], 1 }
 0x4c3   :  { %2231 = vsyncpa [#allocation6], 1 }
 0x4c4   :  { %2233 = vsyncpa [#allocation6 + $0x1], 1 }
 0x4c5   :  { %2234 = vsyncpa [#allocation17], 1 }
 0x4c6   :  { %2236 = vsyncpa [#allocation17 + $0x1], 1 }

</bundles_post_ra>
